<compile_context>
chip_gen: v7x
topology: tpu7x:2x2x1
jax: 0.10.0
libtpu: 0.0.40
codegen_flags: <defaults>
</compile_context>

<pallas_src>
import functools
import math

import jax
import jax.numpy as jnp
from jax.experimental import pallas as pl
from jax.experimental.pallas import tpu as pltpu


# ---------------------------------------------------------------------------
# Kernel
# ---------------------------------------------------------------------------
def _mha_kernel(x_ref, wq_ref, bq_ref, wk_ref, bk_ref, wv_ref, bv_ref,
                wo_ref, bo_ref, out_ref, score_ref, *, n_heads, scale, causal):
    # x_ref:     (1, S, D)       activation tile for one batch element
    # wq/wk_ref: (H, D, dq)      per-head stacked projection weights
    # wv_ref:    (H, D, dv)
    # bq/bk_ref: (H, 1, dq)      per-head biases
    # bv_ref:    (H, 1, dv)
    # wo_ref:    (H*dv, D)       output projection (in, out)
    # bo_ref:    (1, D)
    # out_ref:   (1, S, D)
    # score_ref: (1, H, S, S)    raw scaled scores (pre-mask, pre-softmax)
    x = x_ref[0].astype(jnp.float32)            # (S, D)
    seq = x.shape[0]

    head_outs = []
    for i in range(n_heads):                    # static unroll (small h)
        q_i = jnp.dot(x, wq_ref[i].astype(jnp.float32),
                      preferred_element_type=jnp.float32) + bq_ref[i]
        k_i = jnp.dot(x, wk_ref[i].astype(jnp.float32),
                      preferred_element_type=jnp.float32) + bk_ref[i]
        v_i = jnp.dot(x, wv_ref[i].astype(jnp.float32),
                      preferred_element_type=jnp.float32) + bv_ref[i]

        # Q @ K^T without materializing a transpose.
        s_i = jax.lax.dot_general(
            q_i, k_i, (((1,), (1,)), ((), ())),
            preferred_element_type=jnp.float32) * scale        # (S, S)

        # torch saves the score BEFORE masking / softmax.
        score_ref[0, i] = s_i.astype(score_ref.dtype)

        if causal:
            row = jax.lax.broadcasted_iota(jnp.int32, (seq, seq), 0)
            col = jax.lax.broadcasted_iota(jnp.int32, (seq, seq), 1)
            s_i = jnp.where(row >= col, s_i, jnp.float32(-(2.0 ** 32) + 1.0))

        # f32 softmax (numerically stable).
        m = jnp.max(s_i, axis=-1, keepdims=True)
        e = jnp.exp(s_i - m)
        p = e / jnp.sum(e, axis=-1, keepdims=True)

        head_outs.append(jnp.dot(p, v_i,
                                 preferred_element_type=jnp.float32))  # (S, dv)

    heads_cat = jnp.concatenate(head_outs, axis=-1)            # (S, H*dv)
    out = jnp.dot(heads_cat, wo_ref[...].astype(jnp.float32),
                  preferred_element_type=jnp.float32) + bo_ref[...]
    out_ref[0] = out.astype(out_ref.dtype)


# ---------------------------------------------------------------------------
# Helpers
# ---------------------------------------------------------------------------
def _round_up(x, m):
    return ((x + m - 1) // m) * m


def _padded_nbytes(shape, dtype):
    """Bytes of one VMEM buffer after (8, 128) tile padding."""
    itemsize = jnp.dtype(dtype).itemsize
    dims = list(shape)
    if not dims:
        return 8 * 128 * itemsize
    dims[-1] = _round_up(dims[-1], 128)
    if len(dims) >= 2:
        dims[-2] = _round_up(dims[-2], 8)
    n = 1
    for d in dims:
        n *= d
    return n * itemsize


# ---------------------------------------------------------------------------
# Wrapper
# ---------------------------------------------------------------------------
def multi_head_attention(x, wq, bq, wk, bk, wv, bv, wo, bo, *,
                         n_heads, causal=False):
    """x: (B, S, d_model). Weights stored as (in, out) (i.e. torch W.T).
    Returns (out (B,S,d_model), score (h*B, S, S)) matching the torch module."""
    B, S, D = x.shape
    dq = wq.shape[1] // n_heads
    dv = wv.shape[1] // n_heads

    # Stack per-head weight slices in the wrapper (pure JAX) so the kernel
    # never reshapes / slices along lanes.
    wq_h = wq.reshape(D, n_heads, dq).transpose(1, 0, 2)   # (H, D, dq)
    wk_h = wk.reshape(D, n_heads, dq).transpose(1, 0, 2)
    wv_h = wv.reshape(D, n_heads, dv).transpose(1, 0, 2)
    bq_h = bq.reshape(1, n_heads, dq).transpose(1, 0, 2)   # (H, 1, dq)
    bk_h = bk.reshape(1, n_heads, dq).transpose(1, 0, 2)
    bv_h = bv.reshape(1, n_heads, dv).transpose(1, 0, 2)
    bo_2d = bo.reshape(1, D)

    scale = 1.0 / math.sqrt(dq)
    kernel = functools.partial(_mha_kernel, n_heads=n_heads, scale=scale,
                               causal=causal)

    # Whole-array VMEM residency for invariant operands (single buffer).
    vmem_spec = pl.BlockSpec(memory_space=pltpu.MemorySpace.VMEM)

    # VMEM budget: double-buffered gridded tiles + single-buffered weights.
    tile_bytes = 2 * (_padded_nbytes((1, S, D), x.dtype)          # x
                      + _padded_nbytes((1, S, D), x.dtype)        # out
                      + _padded_nbytes((1, n_heads, S, S), jnp.float32))
    weight_bytes = (_padded_nbytes((n_heads, D, dq), wq.dtype) * 2
                    + _padded_nbytes((n_heads, D, dv), wv.dtype)
                    + _padded_nbytes((n_heads, 1, dq), bq.dtype) * 2
                    + _padded_nbytes((n_heads, 1, dv), bv.dtype)
                    + _padded_nbytes(wo.shape, wo.dtype)
                    + _padded_nbytes((1, D), bo.dtype))
    vmem_limit = min(max(2 * (tile_bytes + weight_bytes) + (4 << 20), 8 << 20),
                     48 << 20)

    flops = B * (2 * S * D * (n_heads * dq) * 2        # Q, K projections
                 + 2 * S * D * (n_heads * dv)          # V projection
                 + 2 * n_heads * S * S * dq            # Q K^T
                 + 2 * n_heads * S * S * dv            # P V
                 + 2 * S * (n_heads * dv) * D)         # output projection
    in_bytes = sum(int(a.size) * jnp.dtype(a.dtype).itemsize
                   for a in (x, wq, bq, wk, bk, wv, bv, wo, bo))
    out_bytes = (B * S * D * jnp.dtype(x.dtype).itemsize
                 + B * n_heads * S * S * 4)
    cost = pl.CostEstimate(flops=flops,
                           transcendentals=B * n_heads * S * S,
                           bytes_accessed=in_bytes + out_bytes)

    out, scores = pl.pallas_call(
        kernel,
        out_shape=(jax.ShapeDtypeStruct((B, S, D), x.dtype),
                   jax.ShapeDtypeStruct((B, n_heads, S, S), jnp.float32)),
        grid_spec=pltpu.PrefetchScalarGridSpec(
            num_scalar_prefetch=0,
            grid=(B,),
            in_specs=[
                pl.BlockSpec((1, S, D), lambda b: (b, 0, 0)),   # x tile
                vmem_spec,                                      # wq_h
                vmem_spec,                                      # bq_h
                vmem_spec,                                      # wk_h
                vmem_spec,                                      # bk_h
                vmem_spec,                                      # wv_h
                vmem_spec,                                      # bv_h
                vmem_spec,                                      # wo
                vmem_spec,                                      # bo
            ],
            out_specs=[
                pl.BlockSpec((1, S, D), lambda b: (b, 0, 0)),
                pl.BlockSpec((1, n_heads, S, S), lambda b: (b, 0, 0, 0)),
            ],
        ),
        compiler_params=pltpu.CompilerParams(
            dimension_semantics=("parallel",),
            vmem_limit_bytes=int(vmem_limit)),
        cost_estimate=cost,
    )(x, wq_h, bq_h, wk_h, bk_h, wv_h, bv_h, wo, bo_2d)

    # torch ordering: cat(chunk(h, dim=-1), dim=0) -> index = head * B + batch
    scores = scores.transpose(1, 0, 2, 3).reshape(n_heads * B, S, S)
    return out, scores


# ---------------------------------------------------------------------------
# Init (matches torch.nn.Linear uniform(-1/sqrt(fan_in), 1/sqrt(fan_in)),
# weights stored transposed to (in_features, out_features)).
# ---------------------------------------------------------------------------
def init_mha_params(key, d_model, dq, dv, n_heads, dtype=jnp.float32):
    ks = jax.random.split(key, 8)
    b_in = 1.0 / math.sqrt(d_model)
    b_o = 1.0 / math.sqrt(dv * n_heads)
    wq = jax.random.uniform(ks[0], (d_model, dq * n_heads), dtype, -b_in, b_in)
    bq = jax.random.uniform(ks[1], (dq * n_heads,), dtype, -b_in, b_in)
    wk = jax.random.uniform(ks[2], (d_model, dq * n_heads), dtype, -b_in, b_in)
    bk = jax.random.uniform(ks[3], (dq * n_heads,), dtype, -b_in, b_in)
    wv = jax.random.uniform(ks[4], (d_model, dv * n_heads), dtype, -b_in, b_in)
    bv = jax.random.uniform(ks[5], (dv * n_heads,), dtype, -b_in, b_in)
    wo = jax.random.uniform(ks[6], (dv * n_heads, d_model), dtype, -b_o, b_o)
    bo = jax.random.uniform(ks[7], (d_model,), dtype, -b_o, b_o)
    return wq, bq, wk, bk, wv, bv, wo, bo


# ---------------------------------------------------------------------------
# Pure-JAX reference mirroring the torch forward()
# ---------------------------------------------------------------------------
def mha_ref(x, wq, bq, wk, bk, wv, bv, wo, bo, *, n_heads, causal=False):
    B, S, D = x.shape
    dq = wq.shape[1] // n_heads

    def split_heads(t):  # cat(chunk(h, dim=-1), dim=0)
        return jnp.concatenate(jnp.split(t, n_heads, axis=-1), axis=0)

    Q = split_heads(x @ wq + bq)
    K = split_heads(x @ wk + bk)
    V = split_heads(x @ wv + bv)
    score = jnp.matmul(Q, jnp.swapaxes(K, -1, -2)) / math.sqrt(dq)
    raw_score = score
    if causal:
        m = jnp.tril(jnp.ones((S, S), jnp.float32))
        score = jnp.where(m > 0, score, jnp.float32(-(2.0 ** 32) + 1.0))
    p = jax.nn.softmax(score, axis=-1)
    attn = jnp.matmul(p, V)
    heads = jnp.concatenate(jnp.split(attn, n_heads, axis=0), axis=-1)
    out = heads @ wo + bo
    return out, raw_score


# ---------------------------------------------------------------------------
if __name__ == "__main__":
    # Shapes consistent with the module constants: d_model=256, h=4, q=v=4.
    batch, seq = 2, 8
    d_model, n_heads, dq, dv = 256, 4, 4, 4

    key = jax.random.PRNGKey(0)
    kx, kp = jax.random.split(key)
    x = jax.random.normal(kx, (batch, seq, d_model), dtype=jnp.float32)
    params = init_mha_params(kp, d_model, dq, dv, n_heads)

    # Default module path: mask=False (eval / no causal masking).
    out, scores = multi_head_attention(x, *params, n_heads=n_heads,
                                       causal=False)
    out = jax.block_until_ready(out)
    scores = jax.block_until_ready(scores)
    ref_out, ref_scores = mha_ref(x, *params, n_heads=n_heads, causal=False)
    assert out.shape == (batch, seq, d_model)
    assert scores.shape == (n_heads * batch, seq, seq)
    assert jnp.allclose(out, ref_out, atol=1e-4, rtol=1e-4)
    assert jnp.allclose(scores, ref_scores, atol=1e-4, rtol=1e-4)

    # mask=True + stage=='train' path (causal masking).
    out_c, scores_c = multi_head_attention(x, *params, n_heads=n_heads,
                                           causal=True)
    out_c = jax.block_until_ready(out_c)
    ref_out_c, ref_scores_c = mha_ref(x, *params, n_heads=n_heads, causal=True)
    assert jnp.allclose(out_c, ref_out_c, atol=1e-4, rtol=1e-4)
    assert jnp.allclose(scores_c, ref_scores_c, atol=1e-4, rtol=1e-4)

    print("KERNEL_OK")
</pallas_src>

<mosaic_0001>
module attributes {stable_mosaic.version = 11 : i64} {
  func.func @_mha_kernel(%arg0: i32, %arg1: memref<1x8x256xf32, #tpu.memory_space<vmem>>, %arg2: memref<4x256x4xf32, #tpu.memory_space<vmem>>, %arg3: memref<4x1x4xf32, #tpu.memory_space<vmem>>, %arg4: memref<4x256x4xf32, #tpu.memory_space<vmem>>, %arg5: memref<4x1x4xf32, #tpu.memory_space<vmem>>, %arg6: memref<4x256x4xf32, #tpu.memory_space<vmem>>, %arg7: memref<4x1x4xf32, #tpu.memory_space<vmem>>, %arg8: memref<16x256xf32, #tpu.memory_space<vmem>>, %arg9: memref<1x256xf32, #tpu.memory_space<vmem>>, %arg10: memref<1x8x256xf32, #tpu.memory_space<vmem>>, %arg11: memref<1x4x8x8xf32, #tpu.memory_space<vmem>>) attributes {dimension_semantics = [#tpu.dimension_semantics<parallel>], iteration_bounds = array<i64: 2>, scalar_prefetch = 0 : i64, scratch_operands = 0 : i64, tpu.core_type = #tpu.core_type<tc>, window_params = [{transform_indices = @transform_0, window_bounds = array<i64: 1, 8, 256>}, {pipeline_mode = #tpu.pipeline_mode<synchronous>, transform_indices = @transform_1, window_bounds = array<i64: 4, 256, 4>}, {pipeline_mode = #tpu.pipeline_mode<synchronous>, transform_indices = @transform_2, window_bounds = array<i64: 4, 1, 4>}, {pipeline_mode = #tpu.pipeline_mode<synchronous>, transform_indices = @transform_3, window_bounds = array<i64: 4, 256, 4>}, {pipeline_mode = #tpu.pipeline_mode<synchronous>, transform_indices = @transform_4, window_bounds = array<i64: 4, 1, 4>}, {pipeline_mode = #tpu.pipeline_mode<synchronous>, transform_indices = @transform_5, window_bounds = array<i64: 4, 256, 4>}, {pipeline_mode = #tpu.pipeline_mode<synchronous>, transform_indices = @transform_6, window_bounds = array<i64: 4, 1, 4>}, {pipeline_mode = #tpu.pipeline_mode<synchronous>, transform_indices = @transform_7, window_bounds = array<i64: 16, 256>}, {pipeline_mode = #tpu.pipeline_mode<synchronous>, transform_indices = @transform_8, window_bounds = array<i64: 1, 256>}, {transform_indices = @transform_9, window_bounds = array<i64: 1, 8, 256>}, {transform_indices = @transform_10, window_bounds = array<i64: 1, 4, 8, 8>}]} {
    %c0 = arith.constant 0 : index
    %c0_0 = arith.constant 0 : index
    %c0_1 = arith.constant 0 : index
    %0 = vector.load %arg1[%c0, %c0_0, %c0_1] : memref<1x8x256xf32, #tpu.memory_space<vmem>>, vector<1x8x256xf32>
    %1 = vector.shape_cast %0 : vector<1x8x256xf32> to vector<8x256xf32>
    %c0_2 = arith.constant 0 : index
    %c0_3 = arith.constant 0 : index
    %c0_4 = arith.constant 0 : index
    %2 = vector.load %arg2[%c0_2, %c0_3, %c0_4] : memref<4x256x4xf32, #tpu.memory_space<vmem>>, vector<1x256x4xf32>
    %3 = vector.shape_cast %2 : vector<1x256x4xf32> to vector<256x4xf32>
    %cst = arith.constant dense<0.000000e+00> : vector<8x4xf32>
    %4 = tpu.matmul %1, %3, %cst {dimension_numbers = #tpu.dot_dimension_numbers<[1], [0], [0], [1], [0, 0, 1, 1], [], []>} : vector<8x256xf32>, vector<256x4xf32>, vector<8x4xf32> -> vector<8x4xf32>
    %c0_5 = arith.constant 0 : index
    %c0_6 = arith.constant 0 : index
    %c0_7 = arith.constant 0 : index
    %5 = vector.load %arg3[%c0_5, %c0_6, %c0_7] : memref<4x1x4xf32, #tpu.memory_space<vmem>>, vector<1x1x4xf32>
    %6 = vector.shape_cast %5 : vector<1x1x4xf32> to vector<1x4xf32>
    %7 = vector.broadcast %6 : vector<1x4xf32> to vector<8x4xf32>
    %8 = arith.addf %4, %7 : vector<8x4xf32>
    %c0_8 = arith.constant 0 : index
    %c0_9 = arith.constant 0 : index
    %c0_10 = arith.constant 0 : index
    %9 = vector.load %arg4[%c0_8, %c0_9, %c0_10] : memref<4x256x4xf32, #tpu.memory_space<vmem>>, vector<1x256x4xf32>
    %10 = vector.shape_cast %9 : vector<1x256x4xf32> to vector<256x4xf32>
    %cst_11 = arith.constant dense<0.000000e+00> : vector<8x4xf32>
    %11 = tpu.matmul %1, %10, %cst_11 {dimension_numbers = #tpu.dot_dimension_numbers<[1], [0], [0], [1], [0, 0, 1, 1], [], []>} : vector<8x256xf32>, vector<256x4xf32>, vector<8x4xf32> -> vector<8x4xf32>
    %c0_12 = arith.constant 0 : index
    %c0_13 = arith.constant 0 : index
    %c0_14 = arith.constant 0 : index
    %12 = vector.load %arg5[%c0_12, %c0_13, %c0_14] : memref<4x1x4xf32, #tpu.memory_space<vmem>>, vector<1x1x4xf32>
    %13 = vector.shape_cast %12 : vector<1x1x4xf32> to vector<1x4xf32>
    %14 = vector.broadcast %13 : vector<1x4xf32> to vector<8x4xf32>
    %15 = arith.addf %11, %14 : vector<8x4xf32>
    %c0_15 = arith.constant 0 : index
    %c0_16 = arith.constant 0 : index
    %c0_17 = arith.constant 0 : index
    %16 = vector.load %arg6[%c0_15, %c0_16, %c0_17] : memref<4x256x4xf32, #tpu.memory_space<vmem>>, vector<1x256x4xf32>
    %17 = vector.shape_cast %16 : vector<1x256x4xf32> to vector<256x4xf32>
    %cst_18 = arith.constant dense<0.000000e+00> : vector<8x4xf32>
    %18 = tpu.matmul %1, %17, %cst_18 {dimension_numbers = #tpu.dot_dimension_numbers<[1], [0], [0], [1], [0, 0, 1, 1], [], []>} : vector<8x256xf32>, vector<256x4xf32>, vector<8x4xf32> -> vector<8x4xf32>
    %c0_19 = arith.constant 0 : index
    %c0_20 = arith.constant 0 : index
    %c0_21 = arith.constant 0 : index
    %19 = vector.load %arg7[%c0_19, %c0_20, %c0_21] : memref<4x1x4xf32, #tpu.memory_space<vmem>>, vector<1x1x4xf32>
    %20 = vector.shape_cast %19 : vector<1x1x4xf32> to vector<1x4xf32>
    %21 = vector.broadcast %20 : vector<1x4xf32> to vector<8x4xf32>
    %22 = arith.addf %18, %21 : vector<8x4xf32>
    %cst_22 = arith.constant dense<0.000000e+00> : vector<8x8xf32>
    %23 = tpu.matmul %8, %15, %cst_22 {dimension_numbers = #tpu.dot_dimension_numbers<[1], [1], [0], [0], [0, 0, 1, 0], [], []>} : vector<8x4xf32>, vector<8x4xf32>, vector<8x8xf32> -> vector<8x8xf32>
    %cst_23 = arith.constant 5.000000e-01 : f32
    %24 = vector.broadcast %cst_23 : f32 to vector<8x8xf32>
    %25 = arith.mulf %23, %24 : vector<8x8xf32>
    %c0_24 = arith.constant 0 : index
    %c0_25 = arith.constant 0 : index
    %c0_26 = arith.constant 0 : index
    %c0_27 = arith.constant 0 : index
    %26 = vector.load %arg11[%c0_24, %c0_25, %c0_26, %c0_27] : memref<1x4x8x8xf32, #tpu.memory_space<vmem>>, vector<1x1x8x8xf32>
    %27 = vector.shape_cast %26 : vector<1x1x8x8xf32> to vector<8x8xf32>
    %28 = vector.shape_cast %25 : vector<8x8xf32> to vector<1x1x8x8xf32>
    tpu.vector_store %arg11[%c0_24, %c0_25, %c0_26, %c0_27], %28 {strides = array<i32>} : memref<1x4x8x8xf32, #tpu.memory_space<vmem>>, vector<1x1x8x8xf32>,
    %cst_28 = arith.constant dense<0xFF800000> : vector<8xf32>
    %29 = vector.multi_reduction <maximumf>, %25, %cst_28 [1] : vector<8x8xf32> to vector<8xf32>
    %30 = vector.shape_cast %29 : vector<8xf32> to vector<8x1xf32>
    %31 = vector.broadcast %30 : vector<8x1xf32> to vector<8x8xf32>
    %32 = arith.subf %25, %31 : vector<8x8xf32>
    %33 = math.exp %32 : vector<8x8xf32>
    %cst_29 = arith.constant dense<0.000000e+00> : vector<8xf32>
    %34 = vector.multi_reduction <add>, %33, %cst_29 [1] : vector<8x8xf32> to vector<8xf32>
    %35 = vector.shape_cast %34 : vector<8xf32> to vector<8x1xf32>
    %36 = vector.broadcast %35 : vector<8x1xf32> to vector<8x8xf32>
    %37 = arith.divf %33, %36 : vector<8x8xf32>
    %cst_30 = arith.constant dense<0.000000e+00> : vector<8x4xf32>
    %38 = tpu.matmul %37, %22, %cst_30 {dimension_numbers = #tpu.dot_dimension_numbers<[1], [0], [0], [1], [0, 0, 1, 1], [], []>} : vector<8x8xf32>, vector<8x4xf32>, vector<8x4xf32> -> vector<8x4xf32>
    %c1 = arith.constant 1 : index
    %c0_31 = arith.constant 0 : index
    %c0_32 = arith.constant 0 : index
    %39 = vector.load %arg2[%c1, %c0_31, %c0_32] : memref<4x256x4xf32, #tpu.memory_space<vmem>>, vector<1x256x4xf32>
    %40 = vector.shape_cast %39 : vector<1x256x4xf32> to vector<256x4xf32>
    %cst_33 = arith.constant dense<0.000000e+00> : vector<8x4xf32>
    %41 = tpu.matmul %1, %40, %cst_33 {dimension_numbers = #tpu.dot_dimension_numbers<[1], [0], [0], [1], [0, 0, 1, 1], [], []>} : vector<8x256xf32>, vector<256x4xf32>, vector<8x4xf32> -> vector<8x4xf32>
    %c1_34 = arith.constant 1 : index
    %c0_35 = arith.constant 0 : index
    %c0_36 = arith.constant 0 : index
    %42 = vector.load %arg3[%c1_34, %c0_35, %c0_36] : memref<4x1x4xf32, #tpu.memory_space<vmem>>, vector<1x1x4xf32>
    %43 = vector.shape_cast %42 : vector<1x1x4xf32> to vector<1x4xf32>
    %44 = vector.broadcast %43 : vector<1x4xf32> to vector<8x4xf32>
    %45 = arith.addf %41, %44 : vector<8x4xf32>
    %c1_37 = arith.constant 1 : index
    %c0_38 = arith.constant 0 : index
    %c0_39 = arith.constant 0 : index
    %46 = vector.load %arg4[%c1_37, %c0_38, %c0_39] : memref<4x256x4xf32, #tpu.memory_space<vmem>>, vector<1x256x4xf32>
    %47 = vector.shape_cast %46 : vector<1x256x4xf32> to vector<256x4xf32>
    %cst_40 = arith.constant dense<0.000000e+00> : vector<8x4xf32>
    %48 = tpu.matmul %1, %47, %cst_40 {dimension_numbers = #tpu.dot_dimension_numbers<[1], [0], [0], [1], [0, 0, 1, 1], [], []>} : vector<8x256xf32>, vector<256x4xf32>, vector<8x4xf32> -> vector<8x4xf32>
    %c1_41 = arith.constant 1 : index
    %c0_42 = arith.constant 0 : index
    %c0_43 = arith.constant 0 : index
    %49 = vector.load %arg5[%c1_41, %c0_42, %c0_43] : memref<4x1x4xf32, #tpu.memory_space<vmem>>, vector<1x1x4xf32>
    %50 = vector.shape_cast %49 : vector<1x1x4xf32> to vector<1x4xf32>
    %51 = vector.broadcast %50 : vector<1x4xf32> to vector<8x4xf32>
    %52 = arith.addf %48, %51 : vector<8x4xf32>
    %c1_44 = arith.constant 1 : index
    %c0_45 = arith.constant 0 : index
    %c0_46 = arith.constant 0 : index
    %53 = vector.load %arg6[%c1_44, %c0_45, %c0_46] : memref<4x256x4xf32, #tpu.memory_space<vmem>>, vector<1x256x4xf32>
    %54 = vector.shape_cast %53 : vector<1x256x4xf32> to vector<256x4xf32>
    %cst_47 = arith.constant dense<0.000000e+00> : vector<8x4xf32>
    %55 = tpu.matmul %1, %54, %cst_47 {dimension_numbers = #tpu.dot_dimension_numbers<[1], [0], [0], [1], [0, 0, 1, 1], [], []>} : vector<8x256xf32>, vector<256x4xf32>, vector<8x4xf32> -> vector<8x4xf32>
    %c1_48 = arith.constant 1 : index
    %c0_49 = arith.constant 0 : index
    %c0_50 = arith.constant 0 : index
    %56 = vector.load %arg7[%c1_48, %c0_49, %c0_50] : memref<4x1x4xf32, #tpu.memory_space<vmem>>, vector<1x1x4xf32>
    %57 = vector.shape_cast %56 : vector<1x1x4xf32> to vector<1x4xf32>
    %58 = vector.broadcast %57 : vector<1x4xf32> to vector<8x4xf32>
    %59 = arith.addf %55, %58 : vector<8x4xf32>
    %cst_51 = arith.constant dense<0.000000e+00> : vector<8x8xf32>
    %60 = tpu.matmul %45, %52, %cst_51 {dimension_numbers = #tpu.dot_dimension_numbers<[1], [1], [0], [0], [0, 0, 1, 0], [], []>} : vector<8x4xf32>, vector<8x4xf32>, vector<8x8xf32> -> vector<8x8xf32>
    %cst_52 = arith.constant 5.000000e-01 : f32
    %61 = vector.broadcast %cst_52 : f32 to vector<8x8xf32>
    %62 = arith.mulf %60, %61 : vector<8x8xf32>
    %c0_53 = arith.constant 0 : index
    %c1_54 = arith.constant 1 : index
    %c0_55 = arith.constant 0 : index
    %c0_56 = arith.constant 0 : index
    %63 = vector.load %arg11[%c0_53, %c1_54, %c0_55, %c0_56] : memref<1x4x8x8xf32, #tpu.memory_space<vmem>>, vector<1x1x8x8xf32>
    %64 = vector.shape_cast %63 : vector<1x1x8x8xf32> to vector<8x8xf32>
    %65 = vector.shape_cast %62 : vector<8x8xf32> to vector<1x1x8x8xf32>
    tpu.vector_store %arg11[%c0_53, %c1_54, %c0_55, %c0_56], %65 {strides = array<i32>} : memref<1x4x8x8xf32, #tpu.memory_space<vmem>>, vector<1x1x8x8xf32>,
    %cst_57 = arith.constant dense<0xFF800000> : vector<8xf32>
    %66 = vector.multi_reduction <maximumf>, %62, %cst_57 [1] : vector<8x8xf32> to vector<8xf32>
    %67 = vector.shape_cast %66 : vector<8xf32> to vector<8x1xf32>
    %68 = vector.broadcast %67 : vector<8x1xf32> to vector<8x8xf32>
    %69 = arith.subf %62, %68 : vector<8x8xf32>
    %70 = math.exp %69 : vector<8x8xf32>
    %cst_58 = arith.constant dense<0.000000e+00> : vector<8xf32>
    %71 = vector.multi_reduction <add>, %70, %cst_58 [1] : vector<8x8xf32> to vector<8xf32>
    %72 = vector.shape_cast %71 : vector<8xf32> to vector<8x1xf32>
    %73 = vector.broadcast %72 : vector<8x1xf32> to vector<8x8xf32>
    %74 = arith.divf %70, %73 : vector<8x8xf32>
    %cst_59 = arith.constant dense<0.000000e+00> : vector<8x4xf32>
    %75 = tpu.matmul %74, %59, %cst_59 {dimension_numbers = #tpu.dot_dimension_numbers<[1], [0], [0], [1], [0, 0, 1, 1], [], []>} : vector<8x8xf32>, vector<8x4xf32>, vector<8x4xf32> -> vector<8x4xf32>
    %c2 = arith.constant 2 : index
    %c0_60 = arith.constant 0 : index
    %c0_61 = arith.constant 0 : index
    %76 = vector.load %arg2[%c2, %c0_60, %c0_61] : memref<4x256x4xf32, #tpu.memory_space<vmem>>, vector<1x256x4xf32>
    %77 = vector.shape_cast %76 : vector<1x256x4xf32> to vector<256x4xf32>
    %cst_62 = arith.constant dense<0.000000e+00> : vector<8x4xf32>
    %78 = tpu.matmul %1, %77, %cst_62 {dimension_numbers = #tpu.dot_dimension_numbers<[1], [0], [0], [1], [0, 0, 1, 1], [], []>} : vector<8x256xf32>, vector<256x4xf32>, vector<8x4xf32> -> vector<8x4xf32>
    %c2_63 = arith.constant 2 : index
    %c0_64 = arith.constant 0 : index
    %c0_65 = arith.constant 0 : index
    %79 = vector.load %arg3[%c2_63, %c0_64, %c0_65] : memref<4x1x4xf32, #tpu.memory_space<vmem>>, vector<1x1x4xf32>
    %80 = vector.shape_cast %79 : vector<1x1x4xf32> to vector<1x4xf32>
    %81 = vector.broadcast %80 : vector<1x4xf32> to vector<8x4xf32>
    %82 = arith.addf %78, %81 : vector<8x4xf32>
    %c2_66 = arith.constant 2 : index
    %c0_67 = arith.constant 0 : index
    %c0_68 = arith.constant 0 : index
    %83 = vector.load %arg4[%c2_66, %c0_67, %c0_68] : memref<4x256x4xf32, #tpu.memory_space<vmem>>, vector<1x256x4xf32>
    %84 = vector.shape_cast %83 : vector<1x256x4xf32> to vector<256x4xf32>
    %cst_69 = arith.constant dense<0.000000e+00> : vector<8x4xf32>
    %85 = tpu.matmul %1, %84, %cst_69 {dimension_numbers = #tpu.dot_dimension_numbers<[1], [0], [0], [1], [0, 0, 1, 1], [], []>} : vector<8x256xf32>, vector<256x4xf32>, vector<8x4xf32> -> vector<8x4xf32>
    %c2_70 = arith.constant 2 : index
    %c0_71 = arith.constant 0 : index
    %c0_72 = arith.constant 0 : index
    %86 = vector.load %arg5[%c2_70, %c0_71, %c0_72] : memref<4x1x4xf32, #tpu.memory_space<vmem>>, vector<1x1x4xf32>
    %87 = vector.shape_cast %86 : vector<1x1x4xf32> to vector<1x4xf32>
    %88 = vector.broadcast %87 : vector<1x4xf32> to vector<8x4xf32>
    %89 = arith.addf %85, %88 : vector<8x4xf32>
    %c2_73 = arith.constant 2 : index
    %c0_74 = arith.constant 0 : index
    %c0_75 = arith.constant 0 : index
    %90 = vector.load %arg6[%c2_73, %c0_74, %c0_75] : memref<4x256x4xf32, #tpu.memory_space<vmem>>, vector<1x256x4xf32>
    %91 = vector.shape_cast %90 : vector<1x256x4xf32> to vector<256x4xf32>
    %cst_76 = arith.constant dense<0.000000e+00> : vector<8x4xf32>
    %92 = tpu.matmul %1, %91, %cst_76 {dimension_numbers = #tpu.dot_dimension_numbers<[1], [0], [0], [1], [0, 0, 1, 1], [], []>} : vector<8x256xf32>, vector<256x4xf32>, vector<8x4xf32> -> vector<8x4xf32>
    %c2_77 = arith.constant 2 : index
    %c0_78 = arith.constant 0 : index
    %c0_79 = arith.constant 0 : index
    %93 = vector.load %arg7[%c2_77, %c0_78, %c0_79] : memref<4x1x4xf32, #tpu.memory_space<vmem>>, vector<1x1x4xf32>
    %94 = vector.shape_cast %93 : vector<1x1x4xf32> to vector<1x4xf32>
    %95 = vector.broadcast %94 : vector<1x4xf32> to vector<8x4xf32>
    %96 = arith.addf %92, %95 : vector<8x4xf32>
    %cst_80 = arith.constant dense<0.000000e+00> : vector<8x8xf32>
    %97 = tpu.matmul %82, %89, %cst_80 {dimension_numbers = #tpu.dot_dimension_numbers<[1], [1], [0], [0], [0, 0, 1, 0], [], []>} : vector<8x4xf32>, vector<8x4xf32>, vector<8x8xf32> -> vector<8x8xf32>
    %cst_81 = arith.constant 5.000000e-01 : f32
    %98 = vector.broadcast %cst_81 : f32 to vector<8x8xf32>
    %99 = arith.mulf %97, %98 : vector<8x8xf32>
    %c0_82 = arith.constant 0 : index
    %c2_83 = arith.constant 2 : index
    %c0_84 = arith.constant 0 : index
    %c0_85 = arith.constant 0 : index
    %100 = vector.load %arg11[%c0_82, %c2_83, %c0_84, %c0_85] : memref<1x4x8x8xf32, #tpu.memory_space<vmem>>, vector<1x1x8x8xf32>
    %101 = vector.shape_cast %100 : vector<1x1x8x8xf32> to vector<8x8xf32>
    %102 = vector.shape_cast %99 : vector<8x8xf32> to vector<1x1x8x8xf32>
    tpu.vector_store %arg11[%c0_82, %c2_83, %c0_84, %c0_85], %102 {strides = array<i32>} : memref<1x4x8x8xf32, #tpu.memory_space<vmem>>, vector<1x1x8x8xf32>,
    %cst_86 = arith.constant dense<0xFF800000> : vector<8xf32>
    %103 = vector.multi_reduction <maximumf>, %99, %cst_86 [1] : vector<8x8xf32> to vector<8xf32>
    %104 = vector.shape_cast %103 : vector<8xf32> to vector<8x1xf32>
    %105 = vector.broadcast %104 : vector<8x1xf32> to vector<8x8xf32>
    %106 = arith.subf %99, %105 : vector<8x8xf32>
    %107 = math.exp %106 : vector<8x8xf32>
    %cst_87 = arith.constant dense<0.000000e+00> : vector<8xf32>
    %108 = vector.multi_reduction <add>, %107, %cst_87 [1] : vector<8x8xf32> to vector<8xf32>
    %109 = vector.shape_cast %108 : vector<8xf32> to vector<8x1xf32>
    %110 = vector.broadcast %109 : vector<8x1xf32> to vector<8x8xf32>
    %111 = arith.divf %107, %110 : vector<8x8xf32>
    %cst_88 = arith.constant dense<0.000000e+00> : vector<8x4xf32>
    %112 = tpu.matmul %111, %96, %cst_88 {dimension_numbers = #tpu.dot_dimension_numbers<[1], [0], [0], [1], [0, 0, 1, 1], [], []>} : vector<8x8xf32>, vector<8x4xf32>, vector<8x4xf32> -> vector<8x4xf32>
    %c3 = arith.constant 3 : index
    %c0_89 = arith.constant 0 : index
    %c0_90 = arith.constant 0 : index
    %113 = vector.load %arg2[%c3, %c0_89, %c0_90] : memref<4x256x4xf32, #tpu.memory_space<vmem>>, vector<1x256x4xf32>
    %114 = vector.shape_cast %113 : vector<1x256x4xf32> to vector<256x4xf32>
    %cst_91 = arith.constant dense<0.000000e+00> : vector<8x4xf32>
    %115 = tpu.matmul %1, %114, %cst_91 {dimension_numbers = #tpu.dot_dimension_numbers<[1], [0], [0], [1], [0, 0, 1, 1], [], []>} : vector<8x256xf32>, vector<256x4xf32>, vector<8x4xf32> -> vector<8x4xf32>
    %c3_92 = arith.constant 3 : index
    %c0_93 = arith.constant 0 : index
    %c0_94 = arith.constant 0 : index
    %116 = vector.load %arg3[%c3_92, %c0_93, %c0_94] : memref<4x1x4xf32, #tpu.memory_space<vmem>>, vector<1x1x4xf32>
    %117 = vector.shape_cast %116 : vector<1x1x4xf32> to vector<1x4xf32>
    %118 = vector.broadcast %117 : vector<1x4xf32> to vector<8x4xf32>
    %119 = arith.addf %115, %118 : vector<8x4xf32>
    %c3_95 = arith.constant 3 : index
    %c0_96 = arith.constant 0 : index
    %c0_97 = arith.constant 0 : index
    %120 = vector.load %arg4[%c3_95, %c0_96, %c0_97] : memref<4x256x4xf32, #tpu.memory_space<vmem>>, vector<1x256x4xf32>
    %121 = vector.shape_cast %120 : vector<1x256x4xf32> to vector<256x4xf32>
    %cst_98 = arith.constant dense<0.000000e+00> : vector<8x4xf32>
    %122 = tpu.matmul %1, %121, %cst_98 {dimension_numbers = #tpu.dot_dimension_numbers<[1], [0], [0], [1], [0, 0, 1, 1], [], []>} : vector<8x256xf32>, vector<256x4xf32>, vector<8x4xf32> -> vector<8x4xf32>
    %c3_99 = arith.constant 3 : index
    %c0_100 = arith.constant 0 : index
    %c0_101 = arith.constant 0 : index
    %123 = vector.load %arg5[%c3_99, %c0_100, %c0_101] : memref<4x1x4xf32, #tpu.memory_space<vmem>>, vector<1x1x4xf32>
    %124 = vector.shape_cast %123 : vector<1x1x4xf32> to vector<1x4xf32>
    %125 = vector.broadcast %124 : vector<1x4xf32> to vector<8x4xf32>
    %126 = arith.addf %122, %125 : vector<8x4xf32>
    %c3_102 = arith.constant 3 : index
    %c0_103 = arith.constant 0 : index
    %c0_104 = arith.constant 0 : index
    %127 = vector.load %arg6[%c3_102, %c0_103, %c0_104] : memref<4x256x4xf32, #tpu.memory_space<vmem>>, vector<1x256x4xf32>
    %128 = vector.shape_cast %127 : vector<1x256x4xf32> to vector<256x4xf32>
    %cst_105 = arith.constant dense<0.000000e+00> : vector<8x4xf32>
    %129 = tpu.matmul %1, %128, %cst_105 {dimension_numbers = #tpu.dot_dimension_numbers<[1], [0], [0], [1], [0, 0, 1, 1], [], []>} : vector<8x256xf32>, vector<256x4xf32>, vector<8x4xf32> -> vector<8x4xf32>
    %c3_106 = arith.constant 3 : index
    %c0_107 = arith.constant 0 : index
    %c0_108 = arith.constant 0 : index
    %130 = vector.load %arg7[%c3_106, %c0_107, %c0_108] : memref<4x1x4xf32, #tpu.memory_space<vmem>>, vector<1x1x4xf32>
    %131 = vector.shape_cast %130 : vector<1x1x4xf32> to vector<1x4xf32>
    %132 = vector.broadcast %131 : vector<1x4xf32> to vector<8x4xf32>
    %133 = arith.addf %129, %132 : vector<8x4xf32>
    %cst_109 = arith.constant dense<0.000000e+00> : vector<8x8xf32>
    %134 = tpu.matmul %119, %126, %cst_109 {dimension_numbers = #tpu.dot_dimension_numbers<[1], [1], [0], [0], [0, 0, 1, 0], [], []>} : vector<8x4xf32>, vector<8x4xf32>, vector<8x8xf32> -> vector<8x8xf32>
    %cst_110 = arith.constant 5.000000e-01 : f32
    %135 = vector.broadcast %cst_110 : f32 to vector<8x8xf32>
    %136 = arith.mulf %134, %135 : vector<8x8xf32>
    %c0_111 = arith.constant 0 : index
    %c3_112 = arith.constant 3 : index
    %c0_113 = arith.constant 0 : index
    %c0_114 = arith.constant 0 : index
    %137 = vector.load %arg11[%c0_111, %c3_112, %c0_113, %c0_114] : memref<1x4x8x8xf32, #tpu.memory_space<vmem>>, vector<1x1x8x8xf32>
    %138 = vector.shape_cast %137 : vector<1x1x8x8xf32> to vector<8x8xf32>
    %139 = vector.shape_cast %136 : vector<8x8xf32> to vector<1x1x8x8xf32>
    tpu.vector_store %arg11[%c0_111, %c3_112, %c0_113, %c0_114], %139 {strides = array<i32>} : memref<1x4x8x8xf32, #tpu.memory_space<vmem>>, vector<1x1x8x8xf32>,
    %cst_115 = arith.constant dense<0xFF800000> : vector<8xf32>
    %140 = vector.multi_reduction <maximumf>, %136, %cst_115 [1] : vector<8x8xf32> to vector<8xf32>
    %141 = vector.shape_cast %140 : vector<8xf32> to vector<8x1xf32>
    %142 = vector.broadcast %141 : vector<8x1xf32> to vector<8x8xf32>
    %143 = arith.subf %136, %142 : vector<8x8xf32>
    %144 = math.exp %143 : vector<8x8xf32>
    %cst_116 = arith.constant dense<0.000000e+00> : vector<8xf32>
    %145 = vector.multi_reduction <add>, %144, %cst_116 [1] : vector<8x8xf32> to vector<8xf32>
    %146 = vector.shape_cast %145 : vector<8xf32> to vector<8x1xf32>
    %147 = vector.broadcast %146 : vector<8x1xf32> to vector<8x8xf32>
    %148 = arith.divf %144, %147 : vector<8x8xf32>
    %cst_117 = arith.constant dense<0.000000e+00> : vector<8x4xf32>
    %149 = tpu.matmul %148, %133, %cst_117 {dimension_numbers = #tpu.dot_dimension_numbers<[1], [0], [0], [1], [0, 0, 1, 1], [], []>} : vector<8x8xf32>, vector<8x4xf32>, vector<8x4xf32> -> vector<8x4xf32>
    %150 = tpu.concatenate %38, %75, %112, %149 in 1 : vector<8x4xf32>, vector<8x4xf32>, vector<8x4xf32>, vector<8x4xf32> -> vector<8x16xf32>
    %c0_118 = arith.constant 0 : index
    %c0_119 = arith.constant 0 : index
    %151 = vector.load %arg8[%c0_118, %c0_119] : memref<16x256xf32, #tpu.memory_space<vmem>>, vector<16x256xf32>
    %cst_120 = arith.constant dense<0.000000e+00> : vector<8x256xf32>
    %152 = tpu.matmul %150, %151, %cst_120 {dimension_numbers = #tpu.dot_dimension_numbers<[1], [0], [0], [1], [0, 0, 1, 1], [], []>} : vector<8x16xf32>, vector<16x256xf32>, vector<8x256xf32> -> vector<8x256xf32>
    %c0_121 = arith.constant 0 : index
    %c0_122 = arith.constant 0 : index
    %153 = vector.load %arg9[%c0_121, %c0_122] : memref<1x256xf32, #tpu.memory_space<vmem>>, vector<1x256xf32>
    %154 = vector.broadcast %153 : vector<1x256xf32> to vector<8x256xf32>
    %155 = arith.addf %152, %154 : vector<8x256xf32>
    %c0_123 = arith.constant 0 : index
    %c0_124 = arith.constant 0 : index
    %c0_125 = arith.constant 0 : index
    %156 = vector.load %arg10[%c0_123, %c0_124, %c0_125] : memref<1x8x256xf32, #tpu.memory_space<vmem>>, vector<1x8x256xf32>
    %157 = vector.shape_cast %156 : vector<1x8x256xf32> to vector<8x256xf32>
    %158 = vector.shape_cast %155 : vector<8x256xf32> to vector<1x8x256xf32>
    tpu.vector_store %arg10[%c0_123, %c0_124, %c0_125], %158 {strides = array<i32>} : memref<1x8x256xf32, #tpu.memory_space<vmem>>, vector<1x8x256xf32>,
    return
  }
  func.func @transform_0(%arg0: i32) -> (i32, i32, i32) {
    %c0_i32 = arith.constant 0 : i32
    %c0_i32_0 = arith.constant 0 : i32
    %c0_i32_1 = arith.constant 0 : i32
    return %arg0, %c0_i32, %c0_i32_0 : i32, i32, i32
  }
  func.func @transform_1(%arg0: i32) -> (i32, i32, i32) {
    %c0_i32 = arith.constant 0 : i32
    %c0_i32_0 = arith.constant 0 : i32
    %c0_i32_1 = arith.constant 0 : i32
    %c0_i32_2 = arith.constant 0 : i32
    return %c0_i32, %c0_i32_0, %c0_i32_1 : i32, i32, i32
  }
  func.func @transform_2(%arg0: i32) -> (i32, i32, i32) {
    %c0_i32 = arith.constant 0 : i32
    %c0_i32_0 = arith.constant 0 : i32
    %c0_i32_1 = arith.constant 0 : i32
    %c0_i32_2 = arith.constant 0 : i32
    return %c0_i32, %c0_i32_0, %c0_i32_1 : i32, i32, i32
  }
  func.func @transform_3(%arg0: i32) -> (i32, i32, i32) {
    %c0_i32 = arith.constant 0 : i32
    %c0_i32_0 = arith.constant 0 : i32
    %c0_i32_1 = arith.constant 0 : i32
    %c0_i32_2 = arith.constant 0 : i32
    return %c0_i32, %c0_i32_0, %c0_i32_1 : i32, i32, i32
  }
  func.func @transform_4(%arg0: i32) -> (i32, i32, i32) {
    %c0_i32 = arith.constant 0 : i32
    %c0_i32_0 = arith.constant 0 : i32
    %c0_i32_1 = arith.constant 0 : i32
    %c0_i32_2 = arith.constant 0 : i32
    return %c0_i32, %c0_i32_0, %c0_i32_1 : i32, i32, i32
  }
  func.func @transform_5(%arg0: i32) -> (i32, i32, i32) {
    %c0_i32 = arith.constant 0 : i32
    %c0_i32_0 = arith.constant 0 : i32
    %c0_i32_1 = arith.constant 0 : i32
    %c0_i32_2 = arith.constant 0 : i32
    return %c0_i32, %c0_i32_0, %c0_i32_1 : i32, i32, i32
  }
  func.func @transform_6(%arg0: i32) -> (i32, i32, i32) {
    %c0_i32 = arith.constant 0 : i32
    %c0_i32_0 = arith.constant 0 : i32
    %c0_i32_1 = arith.constant 0 : i32
    %c0_i32_2 = arith.constant 0 : i32
    return %c0_i32, %c0_i32_0, %c0_i32_1 : i32, i32, i32
  }
  func.func @transform_7(%arg0: i32) -> (i32, i32) {
    %c0_i32 = arith.constant 0 : i32
    %c0_i32_0 = arith.constant 0 : i32
    %c0_i32_1 = arith.constant 0 : i32
    return %c0_i32, %c0_i32_0 : i32, i32
  }
  func.func @transform_8(%arg0: i32) -> (i32, i32) {
    %c0_i32 = arith.constant 0 : i32
    %c0_i32_0 = arith.constant 0 : i32
    %c0_i32_1 = arith.constant 0 : i32
    return %c0_i32, %c0_i32_0 : i32, i32
  }
  func.func @transform_9(%arg0: i32) -> (i32, i32, i32) {
    %c0_i32 = arith.constant 0 : i32
    %c0_i32_0 = arith.constant 0 : i32
    %c0_i32_1 = arith.constant 0 : i32
    return %arg0, %c0_i32, %c0_i32_0 : i32, i32, i32
  }
  func.func @transform_10(%arg0: i32) -> (i32, i32, i32, i32) {
    %c0_i32 = arith.constant 0 : i32
    %c0_i32_0 = arith.constant 0 : i32
    %c0_i32_1 = arith.constant 0 : i32
    %c0_i32_2 = arith.constant 0 : i32
    return %arg0, %c0_i32, %c0_i32_0, %c0_i32_1 : i32, i32, i32, i32
  }
}

</mosaic_0001>

<bundles_post_ra>
// kernel: tpu_custom_call.1
= control target key start
LH: loop header
LB: loop body
LE: loop exit
PB: predicated region body
PF: predicated region fallthrough
CT: control target
= control target key end

     0   :  { %s5485_s0 = inlined_call_operand.vmem [shape: f32[2,8,256], index: 0, kind: input, shape index: {}]   ;;  %s5486_s1 = inlined_call_operand.vmem [shape: f32[4,256,4], index: 1, kind: input, shape index: {}]   ;;  %s5487_s2 = inlined_call_operand.vmem [shape: f32[4,1,4], index: 2, kind: input, shape index: {}]   ;;  %s5488_s3 = inlined_call_operand.vmem [shape: f32[4,256,4], index: 3, kind: input, shape index: {}]   ;;  %s5489_s4 = inlined_call_operand.vmem [shape: f32[4,1,4], index: 4, kind: input, shape index: {}]   ;;  %s5490_s5 = inlined_call_operand.vmem [shape: f32[4,256,4], index: 5, kind: input, shape index: {}]   ;;  %s5491_s6 = inlined_call_operand.vmem [shape: f32[4,1,4], index: 6, kind: input, shape index: {}]   ;;  %s5492_s7 = inlined_call_operand.vmem [shape: f32[16,256], index: 7, kind: input, shape index: {}]   ;;  %s5493_s8 = inlined_call_operand.vmem [shape: f32[1,256], index: 8, kind: input, shape index: {}]   ;;  %s5494_s9 = inlined_call_operand.hbm [shape: f32[2,8,256], index: 9, kind: output, shape index: {0}]   ;;  %s5495_s10 = inlined_call_operand.hbm [shape: f32[2,4,8,8], index: 10, kind: output, shape index: {1}]  }
   0x1   :  { %5497 = sst [smem:[#allocation10_spill]] %s5485_s0 }
   0x2   :  { %16 = vsyncpa [#allocation3], 0 }
   0x3   :  { %18 = vsyncpa [#allocation3 + $0x1], 0 }
   0x4   :  { %19 = vsyncpa [#allocation5], 0 }
   0x5   :  { %21 = vsyncpa [#allocation5 + $0x1], 0  ;;  %s4021_s13 = smov 0   ;;  %s4023_s14 = smov 0  }
   0x6   :  { %s4025_s15 = smov 0   ;;  %s4027_s16 = smov 0  }
   0x7 LB: > { %5498 = sst [smem:[#allocation8_spill]] %s3952_s15  ;;  %s4042_s17 = sadd.s32 4294967295, %s3956_s16   ;;  %s3956_s16 = sphi %s4027_s16, %s5507_s16   ;;  %s3952_s15 = sphi %s4025_s15, %s5504_s15   ;;  %s3948_s14 = sphi %s4023_s14, %s5506_s14   ;;  %s3944_s13 = sphi %s4021_s13, %s5505_s13  }
   0x8   : > { %s2586_s18 = sadd.s32 4294967294, %s3956_s16   ;;  %s4046_s19 = sadd.s32 1, %s3956_s16  }
   0x9   : > { %s228_s20 = sadd.s32 1, %s3952_s15  ;;  %s225_s21 = ssub.s32 %s3956_s16, %s4046_s19 }
   0xa   : > { %p238_p0 = scmp.ne.s32.totalorder %s3952_s15, %s3948_s14  ;;  %p226_p1 = scmp.eq.s32.totalorder %s225_s21, 0 }
   0xb   : > { %p239_p2 = scmp.eq.s32.totalorder %s4042_s17, 1  ;;  %p244_p3 = scmp.ne.s32.totalorder %s3948_s14, %s3944_s13 }
   0xc   : > { %p245_p4 = scmp.eq.s32.totalorder %s2586_s18, 1  ;;  %p2589_p7 = scmp.ge.s32.totalorder %s3956_s16, 1 }
   0xd   : > { %s4057_s22 = scalar_select %p226_p1, %s3952_s15, %s228_s20  }
   0xe   : > { %p4059_p5 = por %p239_p2, %p238_p0  ;;  %p4063_p6 = por %p245_p4, %p244_p3 }
   0xf   : > { %5499 = sst [smem:[#allocation9_spill]] %s4057_s22  ;;  %p321_p8 = scmp.lt.s32.totalorder %s3956_s16, 3 }
  0x11   : > { %p322_p9 = pnand %p2589_p7, %p321_p8 }
  0x12   : > { %v496_v0 = vld [vmem:[%s5488_s3 + $0x80] sm:$0xff] (!%p322_p9)  ;;  %v497_v1 = vld [vmem:[%s5488_s3 + $0x88] sm:$0xff] (!%p322_p9)  ;;  %v498_v11 = vld [vmem:[%s5488_s3 + $0x90] sm:$0xff] (!%p322_p9)  ;;  %p364_p10 = scmp.lt.s32.totalorder (!%p322_p9), %s4042_s17, 1  ;;  %s5502_s0 = sld [smem:[#allocation10_spill]] (!%p322_p9)  ;;  %vm3959_vm0 = vmmov (!%p322_p9), 0  }
  0x13   : > { %325 = sbr.rel (%p322_p9) target bundleno = 3689 (0xe69), region = 56  ;;  %v480_v2 = vld [vmem:[%s5488_s3] sm:$0xff] (!%p322_p9)  ;;  %v3438_v3 = vpack.c.bf16 (!%p322_p9), %v497_v1, %v496_v0  ;;  %v481_v4 = vld [vmem:[%s5488_s3 + $0x8] sm:$0xff] (!%p322_p9)  ;;  %v499_v13 = vld [vmem:[%s5488_s3 + $0x98] sm:$0xff] (!%p322_p9)  ;;  %vm698_vm1 = vcmask (!%p322_p9), 31744   ;;  %s4397_s29 = sand.u32 (!%p322_p9), 1, %s3948_s14  }
  0x14   : > { %v387_v5 = vld [vmem:[%s5486_s1 + $0x80] sm:$0xff] (!%p322_p9)  ;;  %v388_v6 = vld [vmem:[%s5486_s1 + $0x88] sm:$0xff] (!%p322_p9)  ;;  %v3440_v7 = vpack.c.bf16 (!%p322_p9), %v481_v4, %v480_v2  ;;  %v482_v14 = vld [vmem:[%s5488_s3 + $0x10] sm:$0xff] (!%p322_p9)  ;;  %v3442_v16 = vpack.c.bf16 (!%p322_p9), %v499_v13, %v498_v11  ;;  %s2591_s30 = sshll.u32 (!%p322_p9), %s4397_s29, 5  ;;  %vm776_vm2 = vcmask (!%p322_p9), 64512   ;;  %s3960_s27 = smov (!%p322_p9), 4  }
  0x15   : > { %v3406_v8 = vpack.c.bf16 (!%p322_p9), %v388_v6, %v387_v5  ;;  %v371_v9 = vld [vmem:[%s5486_s1] sm:$0xff] (!%p322_p9)  ;;  %v372_v10 = vld [vmem:[%s5486_s1 + $0x8] sm:$0xff] (!%p322_p9)  ;;  %3439 = vmatprep.subr.bf16.mxu1 (!%p322_p9), %v3438_v3  ;;  %v483_v15 = vld [vmem:[%s5488_s3 + $0x18] sm:$0xff] (!%p322_p9)  ;;  %s3961_s28 = smov (!%p322_p9), 8   ;;  %vm2364_vm3 = vcmask (!%p322_p9), 97280   ;;  %vm2382_vm4 = vcmask (!%p322_p9), 130048  }
  0x16   : > { %v3408_v12 = vpack.c.bf16 (!%p322_p9), %v372_v10, %v371_v9  ;;  %3441 = vmatpush3.bf16.msra.mxu1 (!%p322_p9), %v3440_v7  ;;  %v3444_v17 = vpack.c.bf16 (!%p322_p9), %v483_v15, %v482_v14  ;;  %v389_v18 = vld [vmem:[%s5486_s1 + $0x90] sm:$0xff] (!%p322_p9)  ;;  %v390_v19 = vld [vmem:[%s5486_s1 + $0x98] sm:$0xff] (!%p322_p9)  ;;  %v500_v23 = vld [vmem:[%s5488_s3 + $0xa0] sm:$0xff] (!%p322_p9)  ;;  %s2929_s22 = sshll.u32 (!%p322_p9), %s4042_s17, 9  ;;  %s2465_s15 = scalar_lea.sflag (!%p322_p9), [#allocation5], %s4397_s29 }
  0x17   : > { %3407 = vmatprep.subr.bf16.mxu0 (!%p322_p9), %v3406_v8  ;;  %v373_v20 = vld [vmem:[%s5486_s1 + $0x10] sm:$0xff] (!%p322_p9)  ;;  %v3410_v21 = vpack.c.bf16 (!%p322_p9), %v390_v19, %v389_v18  ;;  %v374_v22 = vld [vmem:[%s5486_s1 + $0x18] sm:$0xff] (!%p322_p9)  ;;  %v501_v24 = vld [vmem:[%s5488_s3 + $0xa8] sm:$0xff] (!%p322_p9)  ;;  %3443 = vmatprep.subr.bf16.mxu1 (!%p322_p9), %v3442_v16  ;;  %s3963_s18 = smov (!%p322_p9), [#allocation4]  }
  0x18   : > { %3409 = vmatpush3.bf16.msra.mxu0 (!%p322_p9), %v3408_v12  ;;  %v3412_v25 = vpack.c.bf16 (!%p322_p9), %v374_v22, %v373_v20  ;;  %v3446_v26 = vpack.c.bf16 (!%p322_p9), %v501_v24, %v500_v23  ;;  %v484_v27 = vld [vmem:[%s5488_s3 + $0x20] sm:$0xff] (!%p322_p9)  ;;  %v485_v28 = vld [vmem:[%s5488_s3 + $0x28] sm:$0xff] (!%p322_p9)  ;;  %v502_v35 = vld [vmem:[%s5488_s3 + $0xb0] sm:$0xff] (!%p322_p9)  ;;  %s3866_s26 = sshll.u32 (!%p322_p9), %s3963_s18, 4  ;;  %s3867_s26 = int_to_ptr.vmem [resolvable:$false] %s3866_s26 }
  0x19   : > { %v391_v29 = vld [vmem:[%s5486_s1 + $0xa0] sm:$0xff] (!%p322_p9)  ;;  %3411 = vmatprep.subr.bf16.mxu0 (!%p322_p9), %v3410_v21  ;;  %v392_v30 = vld [vmem:[%s5486_s1 + $0xa8] sm:$0xff] (!%p322_p9)  ;;  %v3448_v33 = vpack.c.bf16 (!%p322_p9), %v485_v28, %v484_v27  ;;  %v503_v36 = vld [vmem:[%s5488_s3 + $0xb8] sm:$0xff] (!%p322_p9) }
  0x1a   : > { %v375_v31 = vld [vmem:[%s5486_s1 + $0x20] sm:$0xff]  ;;  %v376_v32 = vld [vmem:[%s5486_s1 + $0x28] sm:$0xff]  ;;  %3445 = vmatpush3.bf16.msra.mxu1 %v3444_v17  ;;  %v3414_v34 = vpack.c.bf16 %v392_v30, %v391_v29  ;;  %v486_v37 = vld [vmem:[%s5488_s3 + $0x30] sm:$0xff]  ;;  %v3450_v39 = vpack.c.bf16 %v503_v36, %v502_v35  ;;  %s4172_s25 = scalar_select %p364_p10, %s4042_s17, 1 }
  0x1b   : > { %3447 = vmatprep.subr.bf16.mxu1 %v3446_v26  ;;  %v3416_v38 = vpack.c.bf16 %v376_v32, %v375_v31  ;;  %v487_v40 = vld [vmem:[%s5488_s3 + $0x38] sm:$0xff]  ;;  %v393_v41 = vld [vmem:[%s5486_s1 + $0xb0] sm:$0xff]  ;;  %v504_v46 = vld [vmem:[%s5488_s3 + $0xc0] sm:$0xff] }
  0x1c   : > { %3413 = vmatpush3.bf16.msra.mxu0 %v3412_v25  ;;  %v394_v42 = vld [vmem:[%s5486_s1 + $0xb8] sm:$0xff]  ;;  %v377_v44 = vld [vmem:[%s5486_s1 + $0x30] sm:$0xff]  ;;  %v505_v47 = vld [vmem:[%s5488_s3 + $0xc8] sm:$0xff]  ;;  %v3452_v48 = vpack.c.bf16 %v487_v40, %v486_v37  ;;  %s2927_s20 = sshll.u32 %s4172_s25, 4  ;;  %s4400_s25 = scalar_lea.vmem [#allocation4], %s2591_s30 }
  0x1d   : > { %3415 = vmatprep.subr.bf16.mxu0 %v3414_v34  ;;  %v3418_v43 = vpack.c.bf16 %v394_v42, %v393_v41  ;;  %v378_v45 = vld [vmem:[%s5486_s1 + $0x38] sm:$0xff]  ;;  %v395_v49 = vld [vmem:[%s5486_s1 + $0xc0] sm:$0xff]  ;;  %v396_v50 = vld [vmem:[%s5486_s1 + $0xc8] sm:$0xff]  ;;  %v3454_v52 = vpack.c.bf16 %v505_v47, %v504_v46  ;;  %s4220_s21 = scalar_lea.vmem %s5502_s0, %s2927_s20  ;;  %v3958_v34 = vmov 0.0   ;;  %s2492_s30 = sshll.u32 %s4400_s25, 4  ;;  %s5401_s30 = int_to_ptr.vmem [resolvable:$true] %s2492_s30 }
  0x1e   : > { %3449 = vmatpush3.bf16.msra.mxu1 %v3448_v33  ;;  %v3420_v51 = vpack.c.bf16 %v378_v45, %v377_v44  ;;  %v488_v53 = vld [vmem:[%s5488_s3 + $0x40] sm:$0xff]  ;;  %v489_v54 = vld [vmem:[%s5488_s3 + $0x48] sm:$0xff]  ;;  %v3422_v56 = vpack.c.bf16 %v396_v50, %v395_v49  ;;  %v506_v58 = vld [vmem:[%s5488_s3 + $0xd0] sm:$0xff]  ;;  %s3862_s12 = scalar_lea.vmem %s5401_s30, 512  ;;  %p3869_p0 = scmp.lt.s32.totalorder %s5401_s30, %s3867_s26 }
  0x1f   : > { %3451 = vmatprep.subr.bf16.mxu1 %v3450_v39  ;;  %v379_v55 = vld [vmem:[%s5486_s1 + $0x40] sm:$0xff]  ;;  %v380_v57 = vld [vmem:[%s5486_s1 + $0x48] sm:$0xff]  ;;  %v507_v59 = vld [vmem:[%s5488_s3 + $0xd8] sm:$0xff]  ;;  %v3456_v62 = vpack.c.bf16 %v489_v54, %v488_v53  ;;  %p3863_p11 = scmp.ne.s32.totalorder %s5401_s30, %s3862_s12 }
  0x20   : > { %3417 = vmatpush3.bf16.msra.mxu0 %v3416_v38  ;;  %v397_v60 = vld [vmem:[%s5486_s1 + $0xd0] sm:$0xff]  ;;  %v398_v61 = vld [vmem:[%s5486_s1 + $0xd8] sm:$0xff]  ;;  %v3424_v63 = vpack.c.bf16 %v380_v57, %v379_v55  ;;  %v3458_v0 = vpack.c.bf16 %v507_v59, %v506_v58  ;;  %v508_v6 = vld [vmem:[%s5488_s3 + $0xe0] sm:$0xff] }
  0x21   : > { %3419 = vmatprep.subr.bf16.mxu0 %v3418_v43  ;;  %v490_v1 = vld [vmem:[%s5488_s3 + $0x50] sm:$0xff]  ;;  %v491_v2 = vld [vmem:[%s5488_s3 + $0x58] sm:$0xff]  ;;  %v3426_v4 = vpack.c.bf16 %v398_v61, %v397_v60  ;;  %v509_v7 = vld [vmem:[%s5488_s3 + $0xe8] sm:$0xff]  ;;  %p3864_p12 = pnand %p3863_p11, %p4059_p5 }
  0x22   : > { %3453 = vmatpush3.bf16.msra.mxu1 %v3452_v48  ;;  %v381_v3 = vld [vmem:[%s5486_s1 + $0x50] sm:$0xff]  ;;  %v382_v5 = vld [vmem:[%s5486_s1 + $0x58] sm:$0xff]  ;;  %v399_v8 = vld [vmem:[%s5486_s1 + $0xe0] sm:$0xff]  ;;  %v3460_v10 = vpack.c.bf16 %v491_v2, %v490_v1  ;;  %v3462_v13 = vpack.c.bf16 %v509_v7, %v508_v6 }
  0x23   : > { %3455 = vmatprep.subr.bf16.mxu1 %v3454_v52  ;;  %v400_v9 = vld [vmem:[%s5486_s1 + $0xe8] sm:$0xff]  ;;  %v3428_v12 = vpack.c.bf16 %v382_v5, %v381_v3  ;;  %v492_v14 = vld [vmem:[%s5488_s3 + $0x60] sm:$0xff]  ;;  %v510_v19 = vld [vmem:[%s5488_s3 + $0xf0] sm:$0xff]  ;;  %p3865_p13 = pneg %p3864_p12 }
  0x24   : > { %3421 = vmatpush3.bf16.msra.mxu0 %v3420_v51  ;;  %v4238_v11 = vld [vmem:[%s4220_s21 + $0x8] sm:$0xff]  ;;  %v383_v16 = vld [vmem:[%s5486_s1 + $0x60] sm:$0xff]  ;;  %v3430_v17 = vpack.c.bf16 %v400_v9, %v399_v8  ;;  %v511_v20 = vld [vmem:[%s5488_s3 + $0xf8] sm:$0xff] }
  0x25   : > { %3423 = vmatprep.subr.bf16.mxu0 %v3422_v56  ;;  %v493_v15 = vld [vmem:[%s5488_s3 + $0x68] sm:$0xff]  ;;  %583 = vmatprep.mubr.f32.mxu1 %v4238_v11  ;;  %v401_v21 = vld [vmem:[%s5486_s1 + $0xf0] sm:$0xff]  ;;  %v402_v22 = vld [vmem:[%s5486_s1 + $0xf8] sm:$0xff]  ;;  %v3466_v25 = vpack.c.bf16 %v511_v20, %v510_v19 }
  0x26   : > { %3457 = vmatpush3.bf16.msra.mxu1 %v3456_v62  ;;  %v384_v18 = vld [vmem:[%s5486_s1 + $0x68] sm:$0xff]  ;;  %474 = vmatprep.mubr.f32.mxu0 %v4238_v11  ;;  %v3464_v23 = vpack.c.bf16 %v493_v15, %v492_v14  ;;  %v494_v26 = vld [vmem:[%s5488_s3 + $0x70] sm:$0xff]  ;;  %v495_v27 = vld [vmem:[%s5488_s3 + $0x78] sm:$0xff]  ;;  %v3434_v28 = vpack.c.bf16 %v402_v22, %v401_v21 }
  0x27   : > { %3459 = vmatprep.subr.bf16.mxu1 %v3458_v0  ;;  %v3432_v24 = vpack.c.bf16 %v384_v18, %v383_v16  ;;  %v385_v29 = vld [vmem:[%s5486_s1 + $0x70] sm:$0xff]  ;;  %v386_v30 = vld [vmem:[%s5486_s1 + $0x78] sm:$0xff]  ;;  %v3468_v31 = vpack.c.bf16 %v495_v27, %v494_v26  ;;  %v4279_v33 = vld [vmem:[%s4220_s21] sm:$0xff] }
  0x28   : > { %3425 = vmatpush3.bf16.msra.mxu0 %v3424_v63  ;;  %v3436_v32 = vpack.c.bf16 %v386_v30, %v385_v29  ;;  %v2595_v36 = vld [vmem:[%s5489_s4] ss:$0 sm:$0xff]  ;;  %v606_v46 = vld [vmem:[%s5490_s5 + $0x88] sm:$0xff]  ;;  %v607_v50 = vld [vmem:[%s5490_s5 + $0x90] sm:$0xff] }
  0x29   : > { %3427 = vmatprep.subr.bf16.mxu0 %v3426_v4  ;;  %v2594_v40 = vld [vmem:[%s5487_s2] ss:$0 sm:$0xff]  ;;  %v590_v49 = vld [vmem:[%s5490_s5 + $0x8] sm:$0xff]  ;;  %v608_v51 = vld [vmem:[%s5490_s5 + $0x98] sm:$0xff] }
  0x2a   : > { %3461 = vmatpush3.bf16.msra.mxu1 %v3460_v10  ;;  %v605_v45 = vld [vmem:[%s5490_s5 + $0x80] sm:$0xff]  ;;  %v3474_v53 = vpack.c.bf16 %v608_v51, %v607_v50  ;;  %v591_v54 = vld [vmem:[%s5490_s5 + $0x10] sm:$0xff]  ;;  %v592_v55 = vld [vmem:[%s5490_s5 + $0x18] sm:$0xff] }
  0x2b   : > { %3463 = vmatprep.subr.bf16.mxu1 %v3462_v13  ;;  %v589_v47 = vld [vmem:[%s5490_s5] sm:$0xff]  ;;  %v3470_v48 = vpack.c.bf16 %v606_v46, %v605_v45  ;;  %v610_v57 = vld [vmem:[%s5490_s5 + $0xa8] sm:$0xff]  ;;  %v3476_v58 = vpack.c.bf16 %v592_v55, %v591_v54  ;;  %v611_v62 = vld [vmem:[%s5490_s5 + $0xb0] sm:$0xff] }
  0x2c   : > { %3429 = vmatpush3.bf16.msra.mxu0 %v3428_v12  ;;  %v3472_v52 = vpack.c.bf16 %v590_v49, %v589_v47  ;;  %v609_v56 = vld [vmem:[%s5490_s5 + $0xa0] sm:$0xff]  ;;  %v594_v61 = vld [vmem:[%s5490_s5 + $0x28] sm:$0xff]  ;;  %v612_v63 = vld [vmem:[%s5490_s5 + $0xb8] sm:$0xff] }
  0x2d   : > { %3431 = vmatprep.subr.bf16.mxu0 %v3430_v17  ;;  %v3478_v59 = vpack.c.bf16 %v610_v57, %v609_v56  ;;  %v593_v60 = vld [vmem:[%s5490_s5 + $0x20] sm:$0xff]  ;;  %v3482_v1 = vpack.c.bf16 %v612_v63, %v611_v62  ;;  %v595_v2 = vld [vmem:[%s5490_s5 + $0x30] sm:$0xff]  ;;  %v596_v3 = vld [vmem:[%s5490_s5 + $0x38] sm:$0xff] }
  0x2e   : > { %3465 = vmatpush3.bf16.msra.mxu1 %v3464_v23  ;;  %v3480_v0 = vpack.c.bf16 %v594_v61, %v593_v60  ;;  %v613_v4 = vld [vmem:[%s5490_s5 + $0xc0] sm:$0xff]  ;;  %v614_v5 = vld [vmem:[%s5490_s5 + $0xc8] sm:$0xff]  ;;  %v3484_v6 = vpack.c.bf16 %v596_v3, %v595_v2  ;;  %v615_v10 = vld [vmem:[%s5490_s5 + $0xd0] sm:$0xff] }
  0x2f   : > { %3467 = vmatprep.subr.bf16.mxu1 %v3466_v25  ;;  %v3486_v7 = vpack.c.bf16 %v614_v5, %v613_v4  ;;  %v597_v8 = vld [vmem:[%s5490_s5 + $0x40] sm:$0xff]  ;;  %v598_v9 = vld [vmem:[%s5490_s5 + $0x48] sm:$0xff]  ;;  %v616_v12 = vld [vmem:[%s5490_s5 + $0xd8] sm:$0xff] }
  0x30   : > { %3433 = vmatpush3.bf16.msra.mxu0 %v3432_v24  ;;  %v3488_v13 = vpack.c.bf16 %v598_v9, %v597_v8  ;;  %v3490_v14 = vpack.c.bf16 %v616_v12, %v615_v10  ;;  %v599_v15 = vld [vmem:[%s5490_s5 + $0x50] sm:$0xff]  ;;  %v600_v16 = vld [vmem:[%s5490_s5 + $0x58] sm:$0xff]  ;;  %v617_v17 = vld [vmem:[%s5490_s5 + $0xe0] sm:$0xff] }
  0x31   : > { %3435 = vmatprep.subr.bf16.mxu0 %v3434_v28  ;;  %v618_v18 = vld [vmem:[%s5490_s5 + $0xe8] sm:$0xff]  ;;  %v3492_v19 = vpack.c.bf16 %v600_v16, %v599_v15  ;;  %v601_v21 = vld [vmem:[%s5490_s5 + $0x60] sm:$0xff]  ;;  %v619_v23 = vld [vmem:[%s5490_s5 + $0xf0] sm:$0xff] }
  0x32   : > { %3469 = vmatpush3.bf16.msra.mxu1 %v3468_v31  ;;  %v3494_v20 = vpack.c.bf16 %v618_v18, %v617_v17  ;;  %v602_v22 = vld [vmem:[%s5490_s5 + $0x68] sm:$0xff]  ;;  %v620_v24 = vld [vmem:[%s5490_s5 + $0xf8] sm:$0xff]  ;;  %v603_v27 = vld [vmem:[%s5490_s5 + $0x70] sm:$0xff] }
  0x33   : > { %3366 = vmatprep.subr.mxu1 %v3958_v34  ;;  %v3496_v25 = vpack.c.bf16 %v602_v22, %v601_v21  ;;  %v3498_v26 = vpack.c.bf16 %v620_v24, %v619_v23  ;;  %v604_v28 = vld [vmem:[%s5490_s5 + $0x78] sm:$0xff]  ;;  %v2634_v47 = vld [vmem:[%s5488_s3 + $0x100] sm:$0xff]  ;;  %v2652_v54 = vld [vmem:[%s5488_s3 + $0x190] sm:$0xff] }
  0x34   : > { %3437 = vmatpush3.bf16.msra.mxu0 %v3436_v32  ;;  %v3500_v29 = vpack.c.bf16 %v604_v28, %v603_v27  ;;  %v2596_v49 = vld [vmem:[%s5491_s6] ss:$0 sm:$0xff]  ;;  %v2653_v56 = vld [vmem:[%s5488_s3 + $0x198] sm:$0xff]  ;;  %v2655_v62 = vld [vmem:[%s5488_s3 + $0x1a8] sm:$0xff] }
  0x35   : > { %584 = vmatmul.mubr.f32.vlgmr.msra.gmra.mrb[0].mxu1 %v4279_v33  ;;  %3471 = vmatprep.subr.bf16.mxu0 %v3470_v48  ;;  %v2635_v48 = vld [vmem:[%s5488_s3 + $0x108] sm:$0xff]  ;;  %v3538_v57 = vpack.c.bf16 %v2653_v56, %v2652_v54  ;;  %v2654_v61 = vld [vmem:[%s5488_s3 + $0x1a0] sm:$0xff]  ;;  %v2656_v3 = vld [vmem:[%s5488_s3 + $0x1b0] sm:$0xff] }
  0x36   : > { %3368 = vmatprep.mubr.msk.f32.mxu1 %vm3959_vm0, %v3958_v34  ;;  %v3536_v50 = vpack.c.bf16 %v2635_v48, %v2634_v47  ;;  %v3542_v63 = vpack.c.bf16 %v2655_v62, %v2654_v61  ;;  %v2657_v4 = vld [vmem:[%s5488_s3 + $0x1b8] sm:$0xff]  ;;  %v2658_v9 = vld [vmem:[%s5488_s3 + $0x1c0] sm:$0xff]  ;;  %v2659_v10 = vld [vmem:[%s5488_s3 + $0x1c8] sm:$0xff] }
  0x37   : > { %475 = vmatmul.mubr.f32.vlgmr.msra.gmra.mrb[0].mxu0 %v4279_v33  ;;  %v3546_v5 = vpack.c.bf16 %v2657_v4, %v2656_v3  ;;  %v3550_v12 = vpack.c.bf16 %v2659_v10, %v2658_v9  ;;  %v2660_v16 = vld [vmem:[%s5488_s3 + $0x1d0] sm:$0xff]  ;;  %v2661_v17 = vld [vmem:[%s5488_s3 + $0x1d8] sm:$0xff]  ;;  %v2662_v22 = vld [vmem:[%s5488_s3 + $0x1e0] sm:$0xff] }
  0x38   : > { %692 = vmatprep.mubr.f32.mxu0 %v4238_v11  ;;  %3473 = vmatpush3.bf16.msra.mxu0 %v3472_v52  ;;  %v2616_v52 = vld [vmem:[%s5486_s1 + $0x180] sm:$0xff]  ;;  %v3554_v18 = vpack.c.bf16 %v2661_v17, %v2660_v16  ;;  %v2663_v23 = vld [vmem:[%s5488_s3 + $0x1e8] sm:$0xff]  ;;  %v2664_v28 = vld [vmem:[%s5488_s3 + $0x1f0] sm:$0xff] }
  0x39   : > { %3475 = vmatprep.subr.bf16.mxu0 %v3474_v53  ;;  %v2617_v53 = vld [vmem:[%s5486_s1 + $0x188] sm:$0xff]  ;;  %v3558_v24 = vpack.c.bf16 %v2663_v23, %v2662_v22  ;;  %v2603_v47 = vld [vmem:[%s5486_s1 + $0x118] sm:$0xff]  ;;  %v2620_v48 = vld [vmem:[%s5486_s1 + $0x1a0] sm:$0xff] }
  0x3a   : > { %v3502_v55 = vpack.c.bf16 %v2617_v53, %v2616_v52  ;;  %v2605_v52 = vld [vmem:[%s5486_s1 + $0x128] sm:$0xff]  ;;  %v2622_v53 = vld [vmem:[%s5486_s1 + $0x1b0] sm:$0xff]  ;;  %v2623_v54 = vld [vmem:[%s5486_s1 + $0x1b8] sm:$0xff] }
  0x3b   : > { %v3514_v56 = vpack.c.bf16 %v2623_v54, %v2622_v53  ;;  %v2667_v22 = vld [vmem:[%s5489_s4 + $0x1] ss:$0 sm:$0xff]  ;;  %v2691_v53 = vld [vmem:[%s5490_s5 + $0x1b8] sm:$0xff] }
  0x3c   : > { %3477 = vmatpush3.bf16.msra.mxu0 %v3476_v58  ;;  %v2636_v58 = vld [vmem:[%s5488_s3 + $0x110] sm:$0xff] }
  0x3d   : > { %3479 = vmatprep.subr.bf16.mxu0 %v3478_v59  ;;  %v2637_v59 = vld [vmem:[%s5488_s3 + $0x118] sm:$0xff] }
  0x3e   : > { %v3540_v60 = vpack.c.bf16 %v2637_v59, %v2636_v58  ;;  %v2607_v58 = vld [vmem:[%s5486_s1 + $0x138] sm:$0xff]  ;;  %v2624_v59 = vld [vmem:[%s5486_s1 + $0x1c0] sm:$0xff] }
  0x40   : > { %3481 = vmatpush3.bf16.msra.mxu0 %v3480_v0  ;;  %v2638_v0 = vld [vmem:[%s5488_s3 + $0x120] sm:$0xff] }
  0x41   : > { %3483 = vmatprep.subr.bf16.mxu0 %v3482_v1  ;;  %v2639_v1 = vld [vmem:[%s5488_s3 + $0x128] sm:$0xff] }
  0x42   : > { %v3544_v2 = vpack.c.bf16 %v2639_v1, %v2638_v0  ;;  %v2609_v0 = vld [vmem:[%s5486_s1 + $0x148] sm:$0xff]  ;;  %v2626_v1 = vld [vmem:[%s5486_s1 + $0x1d0] sm:$0xff] }
  0x44   : > { %3485 = vmatpush3.bf16.msra.mxu0 %v3484_v6  ;;  %v2640_v6 = vld [vmem:[%s5488_s3 + $0x130] sm:$0xff] }
  0x45   : > { %3487 = vmatprep.subr.bf16.mxu0 %v3486_v7  ;;  %v2641_v7 = vld [vmem:[%s5488_s3 + $0x138] sm:$0xff] }
  0x46   : > { %v3548_v8 = vpack.c.bf16 %v2641_v7, %v2640_v6  ;;  %v2611_v6 = vld [vmem:[%s5486_s1 + $0x158] sm:$0xff]  ;;  %v2628_v7 = vld [vmem:[%s5486_s1 + $0x1e0] sm:$0xff] }
  0x48   : > { %3489 = vmatpush3.bf16.msra.mxu0 %v3488_v13  ;;  %v2642_v13 = vld [vmem:[%s5488_s3 + $0x140] sm:$0xff] }
  0x49   : > { %3491 = vmatprep.subr.bf16.mxu0 %v3490_v14  ;;  %v2643_v14 = vld [vmem:[%s5488_s3 + $0x148] sm:$0xff] }
  0x4a   : > { %v3552_v15 = vpack.c.bf16 %v2643_v14, %v2642_v13  ;;  %v2613_v13 = vld [vmem:[%s5486_s1 + $0x168] sm:$0xff]  ;;  %v2630_v14 = vld [vmem:[%s5486_s1 + $0x1f0] sm:$0xff] }
  0x4c   : > { %3493 = vmatpush3.bf16.msra.mxu0 %v3492_v19  ;;  %v2644_v19 = vld [vmem:[%s5488_s3 + $0x150] sm:$0xff] }
  0x4d   : > { %3495 = vmatprep.subr.bf16.mxu0 %v3494_v20  ;;  %v2645_v20 = vld [vmem:[%s5488_s3 + $0x158] sm:$0xff] }
  0x4e   : > { %v3556_v21 = vpack.c.bf16 %v2645_v20, %v2644_v19  ;;  %v2615_v19 = vld [vmem:[%s5486_s1 + $0x178] sm:$0xff] }
  0x50   : > { %3497 = vmatpush3.bf16.msra.mxu0 %v3496_v25  ;;  %v2646_v25 = vld [vmem:[%s5488_s3 + $0x160] sm:$0xff] }
  0x51   : > { %3499 = vmatprep.subr.bf16.mxu0 %v3498_v26  ;;  %v2647_v26 = vld [vmem:[%s5488_s3 + $0x168] sm:$0xff] }
  0x52   : > { %v3560_v27 = vpack.c.bf16 %v2647_v26, %v2646_v25 }
  0x54   : > { %3501 = vmatpush3.bf16.msra.mxu0 %v3500_v29  ;;  %v2665_v29 = vld [vmem:[%s5488_s3 + $0x1f8] sm:$0xff] }
  0x57   : > { %693 = vmatmul.mubr.f32.vlgmr.msra.gmra.mrb[2].mxu0 %v4279_v33 }
  0x58   : > { %1078 = vmatprep.mubr.f32.mxu0 %v4238_v11 }
 0x108   : > { %v2997_v35 = vpop.f32.mrb[0].mxu1 }
 0x109   : > { %v2998_v37 = vpop.f32.mrb[1].mxu1 }
 0x10a   : > { %v2962_v38 = vpop.f32.mrb[0].mxu0  ;;  %v2999_v39 = vadd.f32 %v2998_v37, %v2997_v35 }
 0x10b   : > { %v2963_v41 = vpop.f32.mrb[1].mxu0 }
 0x10c   : > { %v2964_v42 = vadd.f32 %v2963_v41, %v2962_v38  ;;  %v586_v43 = vadd.f32 %v2999_v39, %v2595_v36 }
 0x10e   : > { %v477_v44 = vadd.f32 %v2964_v42, %v2594_v40  ;;  %3367 = vmatpush3.xpose.msk.msra.mxu1 %vm698_vm1, %v586_v43  ;;  %v2650_v43 = vld [vmem:[%s5488_s3 + $0x180] sm:$0xff] }
 0x10f   : > { %3371 = vmatprep.subr.mxu1 %v3958_v34 }
 0x111   : > { %3369 = vmatmul.mubr.msk.f32.vlgmr.msra.gmra.mrb[2].mxu1 %vm698_vm1, %v477_v44  ;;  %v2651_v44 = vld [vmem:[%s5488_s3 + $0x188] sm:$0xff] }
 0x112   : > { %3373 = vmatprep.mubr.msk.f32.mxu1 %vm3959_vm0, %v3958_v34  ;;  %v3534_v46 = vpack.c.bf16 %v2651_v44, %v2650_v43 }
 0x114   : > { %3535 = vmatprep.subr.bf16.mxu0 %v3534_v46  ;;  %v2602_v46 = vld [vmem:[%s5486_s1 + $0x110] sm:$0xff] }
 0x115   : > { %3537 = vmatpush3.bf16.msra.mxu0 %v3536_v50 }
 0x116   : > { %3539 = vmatprep.subr.bf16.mxu0 %v3538_v57  ;;  %v2606_v57 = vld [vmem:[%s5486_s1 + $0x130] sm:$0xff] }
 0x117   : > { %v3516_v61 = vpack.c.bf16 %v2607_v58, %v2606_v57  ;;  %v2675_v57 = vld [vmem:[%s5490_s5 + $0x138] sm:$0xff]  ;;  %v2692_v58 = vld [vmem:[%s5490_s5 + $0x1c0] sm:$0xff] }
 0x119   : > { %3541 = vmatpush3.bf16.msra.mxu0 %v3540_v60  ;;  %v2625_v60 = vld [vmem:[%s5486_s1 + $0x1c8] sm:$0xff] }
 0x11a   : > { %3543 = vmatprep.subr.bf16.mxu0 %v3542_v63  ;;  %v3518_v62 = vpack.c.bf16 %v2625_v60, %v2624_v59  ;;  %v2608_v63 = vld [vmem:[%s5486_s1 + $0x140] sm:$0xff]  ;;  %v2693_v59 = vld [vmem:[%s5490_s5 + $0x1c8] sm:$0xff] }
 0x11b   : > { %v3520_v3 = vpack.c.bf16 %v2609_v0, %v2608_v63  ;;  %v2677_v63 = vld [vmem:[%s5490_s5 + $0x148] sm:$0xff]  ;;  %v2694_v0 = vld [vmem:[%s5490_s5 + $0x1d0] sm:$0xff] }
 0x11d   : > { %3545 = vmatpush3.bf16.msra.mxu0 %v3544_v2  ;;  %v2627_v2 = vld [vmem:[%s5486_s1 + $0x1d8] sm:$0xff] }
 0x11e   : > { %3547 = vmatprep.subr.bf16.mxu0 %v3546_v5  ;;  %v3522_v4 = vpack.c.bf16 %v2627_v2, %v2626_v1  ;;  %v2610_v5 = vld [vmem:[%s5486_s1 + $0x150] sm:$0xff]  ;;  %v2695_v1 = vld [vmem:[%s5490_s5 + $0x1d8] sm:$0xff] }
 0x11f   : > { %v3524_v9 = vpack.c.bf16 %v2611_v6, %v2610_v5  ;;  %v2679_v5 = vld [vmem:[%s5490_s5 + $0x158] sm:$0xff]  ;;  %v2696_v6 = vld [vmem:[%s5490_s5 + $0x1e0] sm:$0xff] }
 0x121   : > { %3549 = vmatpush3.bf16.msra.mxu0 %v3548_v8  ;;  %v2629_v8 = vld [vmem:[%s5486_s1 + $0x1e8] sm:$0xff] }
 0x122   : > { %3551 = vmatprep.subr.bf16.mxu0 %v3550_v12  ;;  %v3526_v10 = vpack.c.bf16 %v2629_v8, %v2628_v7  ;;  %v2612_v12 = vld [vmem:[%s5486_s1 + $0x160] sm:$0xff]  ;;  %v2697_v7 = vld [vmem:[%s5490_s5 + $0x1e8] sm:$0xff] }
 0x123   : > { %v3528_v16 = vpack.c.bf16 %v2613_v13, %v2612_v12  ;;  %v2681_v12 = vld [vmem:[%s5490_s5 + $0x168] sm:$0xff]  ;;  %v2698_v13 = vld [vmem:[%s5490_s5 + $0x1f0] sm:$0xff] }
 0x125   : > { %3553 = vmatpush3.bf16.msra.mxu0 %v3552_v15  ;;  %v2631_v15 = vld [vmem:[%s5486_s1 + $0x1f8] sm:$0xff] }
 0x126   : > { %3555 = vmatprep.subr.bf16.mxu0 %v3554_v18  ;;  %v3530_v17 = vpack.c.bf16 %v2631_v15, %v2630_v14  ;;  %v2614_v18 = vld [vmem:[%s5486_s1 + $0x170] sm:$0xff]  ;;  %v2699_v14 = vld [vmem:[%s5490_s5 + $0x1f8] sm:$0xff] }
 0x127   : > { %v3532_v20 = vpack.c.bf16 %v2615_v19, %v2614_v18  ;;  %v2683_v18 = vld [vmem:[%s5490_s5 + $0x178] sm:$0xff] }
 0x129   : > { %3557 = vmatpush3.bf16.msra.mxu0 %v3556_v21 }
 0x12a   : > { %v3032_v41 = vpop.f32.mrb[2].mxu0  ;;  %3559 = vmatprep.subr.bf16.mxu0 %v3558_v24 }
 0x12b   : > { %v3033_v42 = vpop.f32.mrb[3].mxu0 }
 0x12c   : > { %v3034_v45 = vadd.f32 %v3033_v42, %v3032_v41  ;;  %v2619_v41 = vld [vmem:[%s5486_s1 + $0x198] sm:$0xff] }
 0x12d   : > { %3561 = vmatpush3.bf16.msra.mxu0 %v3560_v27 }
 0x12e   : > { %v695_v51 = vadd.f32 %v3034_v45, %v2596_v49  ;;  %v2621_v49 = vld [vmem:[%s5486_s1 + $0x1a8] sm:$0xff] }
 0x12f   : > { %v3510_v50 = vpack.c.bf16 %v2621_v49, %v2620_v48  ;;  %v2689_v48 = vld [vmem:[%s5490_s5 + $0x1a8] sm:$0xff] }
 0x130   : > { %3372 = vmatpush3.msra.mxu1 %v695_v51  ;;  %v2604_v51 = vld [vmem:[%s5486_s1 + $0x120] sm:$0xff] }
 0x131   : > { %3503 = vmatprep.subr.bf16.mxu1 %v3502_v55  ;;  %v3512_v55 = vpack.c.bf16 %v2605_v52, %v2604_v51  ;;  %v2673_v51 = vld [vmem:[%s5490_s5 + $0x128] sm:$0xff]  ;;  %v2690_v52 = vld [vmem:[%s5490_s5 + $0x1b0] sm:$0xff] }
 0x1e4   : > { %v771_v30 = vpop.f32.mrb[2].mxu1 }
 0x1e5   : > { %v775_v31 = vmul.f32 0.5, %v771_v30  ;;  %v3370_v32 = vpop.f32.mrb[3].mxu1  ;;  %v3562_v30 = vpack.c.bf16 %v2665_v29, %v2664_v28  ;;  %v2633_v29 = vld [vmem:[%s5487_s2 + $0x1] ss:$0 sm:$0xff] }
 0x1e6   : > { %v2649_v32 = vld [vmem:[%s5488_s3 + $0x178] sm:$0xff] }
 0x1e7   : > { %777 = vst.msk [vmem:[%s4400_s25] sm:$0xff] %vm776_vm2, %v775_v31  ;;  %v778_v35 = vsel %vm776_vm2, %v775_v31, -inf  ;;  %3563 = vmatprep.subr.bf16.mxu0 %v3562_v30 }
 0x1e8   : > { %779 = vmax.xlane.f32.xlu0 %v778_v35 }
 0x275   : > { %v780_v36 = vpop.xlane.xlu0 %779 }
 0x276   : > { %v781_v37 = vsub.f32 %v775_v31, %v780_v36  ;;  %v2648_v31 = vld [vmem:[%s5488_s3 + $0x170] sm:$0xff] }
 0x277   : > { %v3564_v35 = vpack.c.bf16 %v2649_v32, %v2648_v31 }
 0x278   : > { %v782_v38 = vmul.f32 1.442695, %v781_v37  ;;  %v2600_v37 = vld [vmem:[%s5486_s1 + $0x100] sm:$0xff] }
 0x279   : > { %3565 = vmatpush3.bf16.msra.mxu0 %v3564_v35  ;;  %v2684_v35 = vld [vmem:[%s5490_s5 + $0x180] sm:$0xff] }
 0x27a   : > { %3844 = vpow2.f32 %v782_v38  ;;  %3376 = vmatprep.subr.mxu0 %v3958_v34  ;;  %v2601_v38 = vld [vmem:[%s5486_s1 + $0x108] sm:$0xff] }
 0x27b   : > { %v3504_v43 = vpack.c.bf16 %v2601_v38, %v2600_v37  ;;  %v2668_v37 = vld [vmem:[%s5490_s5 + $0x100] sm:$0xff] }
 0x27c   : > { %1079 = vmatmul.mubr.f32.vlgmr.msra.gmra.mrb[4].mxu0 %v4279_v33 }
 0x27d   : > { %3378 = vmatprep.mubr.msk.f32.mxu0 %vm3959_vm0, %v3958_v34 }
 0x284   : > { %v4405_v39 = vpop.eup %3844 }
 0x285   : > { %v784_v40 = vsel %vm776_vm2, %v4405_v39, 0.0 }
 0x286   : > { %785 = vadd.xlane.f32.xlu0 %v784_v40  ;;  %v2618_v40 = vld [vmem:[%s5486_s1 + $0x190] sm:$0xff] }
 0x287   : > { %v3506_v45 = vpack.c.bf16 %v2619_v41, %v2618_v40  ;;  %v2669_v40 = vld [vmem:[%s5490_s5 + $0x108] sm:$0xff]  ;;  %v2686_v41 = vld [vmem:[%s5490_s5 + $0x190] sm:$0xff] }
 0x313   : > { %v786_v36 = vpop.xlane.xlu0 %785 }
 0x314   : > { %3846 = vrcp.f32 %v786_v36  ;;  %v2685_v36 = vld [vmem:[%s5490_s5 + $0x188] sm:$0xff] }
 0x315   : > { %v3566_v38 = vpack.c.bf16 %v2685_v36, %v2684_v35  ;;  %v2757_v35 = vld [vmem:[%s5488_s3 + $0x288] sm:$0xff] }
 0x31e   : > { %v3847_v42 = vpop.eup %3846 }
 0x31f   : > { %v788_v44 = vmul.f32 %v3847_v42, %v4405_v39  ;;  %v3508_v39 = vpack.c.bf16 %v2603_v47, %v2602_v46  ;;  %v2687_v42 = vld [vmem:[%s5490_s5 + $0x198] sm:$0xff]  ;;  %v2688_v47 = vld [vmem:[%s5490_s5 + $0x1a0] sm:$0xff] }
 0x320   : > { %v2671_v46 = vld [vmem:[%s5490_s5 + $0x118] sm:$0xff] }
 0x321   : > { %3374 = vmatmul.mubr.msk.f32.vlgmr.msra.gmra.mrb[4].mxu1 %vm776_vm2, %v788_v44  ;;  %v3570_v44 = vpack.c.bf16 %v2687_v42, %v2686_v41  ;;  %v2701_v41 = vld [vmem:[%s5491_s6 + $0x1] ss:$0 sm:$0xff] }
 0x322   : > { %3505 = vmatpush3.bf16.msra.mxu1 %v3504_v43  ;;  %967 = vmatprep.mubr.f32.mxu1 %v4238_v11  ;;  %v3568_v43 = vpack.c.bf16 %v2669_v40, %v2668_v37  ;;  %v2741_v40 = vld [vmem:[%s5488_s3 + $0x208] sm:$0xff] }
 0x323   : > { %3507 = vmatprep.subr.bf16.mxu1 %v3506_v45  ;;  %v2670_v45 = vld [vmem:[%s5490_s5 + $0x110] sm:$0xff] }
 0x324   : > { %v3572_v49 = vpack.c.bf16 %v2671_v46, %v2670_v45  ;;  %v2723_v45 = vld [vmem:[%s5486_s1 + $0x288] sm:$0xff]  ;;  %v2758_v46 = vld [vmem:[%s5488_s3 + $0x290] sm:$0xff] }
 0x326   : > { %3509 = vmatpush3.bf16.msra.mxu1 %v3508_v39  ;;  %v3574_v39 = vpack.c.bf16 %v2689_v48, %v2688_v47  ;;  %v2759_v48 = vld [vmem:[%s5488_s3 + $0x298] sm:$0xff] }
 0x327   : > { %3511 = vmatprep.subr.bf16.mxu1 %v3510_v50  ;;  %v2672_v50 = vld [vmem:[%s5490_s5 + $0x120] sm:$0xff] }
 0x328   : > { %v3576_v54 = vpack.c.bf16 %v2673_v51, %v2672_v50  ;;  %v2743_v50 = vld [vmem:[%s5488_s3 + $0x218] sm:$0xff] }
 0x32a   : > { %3513 = vmatpush3.bf16.msra.mxu1 %v3512_v55  ;;  %v3578_v55 = vpack.c.bf16 %v2691_v53, %v2690_v52  ;;  %v2760_v52 = vld [vmem:[%s5488_s3 + $0x2a0] sm:$0xff]  ;;  %v2761_v53 = vld [vmem:[%s5488_s3 + $0x2a8] sm:$0xff] }
 0x32b   : > { %3515 = vmatprep.subr.bf16.mxu1 %v3514_v56  ;;  %v2674_v56 = vld [vmem:[%s5490_s5 + $0x130] sm:$0xff] }
 0x32c   : > { %v3580_v60 = vpack.c.bf16 %v2675_v57, %v2674_v56  ;;  %v2745_v56 = vld [vmem:[%s5488_s3 + $0x228] sm:$0xff] }
 0x32e   : > { %3517 = vmatpush3.bf16.msra.mxu1 %v3516_v61  ;;  %v3582_v61 = vpack.c.bf16 %v2693_v59, %v2692_v58  ;;  %v2762_v58 = vld [vmem:[%s5488_s3 + $0x2b0] sm:$0xff]  ;;  %v2763_v59 = vld [vmem:[%s5488_s3 + $0x2b8] sm:$0xff] }
 0x32f   : > { %3519 = vmatprep.subr.bf16.mxu1 %v3518_v62  ;;  %v2676_v62 = vld [vmem:[%s5490_s5 + $0x140] sm:$0xff] }
 0x330   : > { %v3584_v2 = vpack.c.bf16 %v2677_v63, %v2676_v62  ;;  %v2747_v62 = vld [vmem:[%s5488_s3 + $0x238] sm:$0xff] }
 0x332   : > { %3521 = vmatpush3.bf16.msra.mxu1 %v3520_v3  ;;  %v3586_v3 = vpack.c.bf16 %v2695_v1, %v2694_v0  ;;  %v2764_v0 = vld [vmem:[%s5488_s3 + $0x2c0] sm:$0xff]  ;;  %v2765_v1 = vld [vmem:[%s5488_s3 + $0x2c8] sm:$0xff] }
 0x333   : > { %3523 = vmatprep.subr.bf16.mxu1 %v3522_v4  ;;  %v2678_v4 = vld [vmem:[%s5490_s5 + $0x150] sm:$0xff] }
 0x334   : > { %v3588_v8 = vpack.c.bf16 %v2679_v5, %v2678_v4  ;;  %v2749_v4 = vld [vmem:[%s5488_s3 + $0x248] sm:$0xff] }
 0x336   : > { %3525 = vmatpush3.bf16.msra.mxu1 %v3524_v9  ;;  %v3590_v9 = vpack.c.bf16 %v2697_v7, %v2696_v6  ;;  %v2766_v6 = vld [vmem:[%s5488_s3 + $0x2d0] sm:$0xff]  ;;  %v2767_v7 = vld [vmem:[%s5488_s3 + $0x2d8] sm:$0xff] }
 0x337   : > { %3527 = vmatprep.subr.bf16.mxu1 %v3526_v10  ;;  %v2680_v10 = vld [vmem:[%s5490_s5 + $0x160] sm:$0xff] }
 0x338   : > { %v3592_v15 = vpack.c.bf16 %v2681_v12, %v2680_v10  ;;  %v2751_v10 = vld [vmem:[%s5488_s3 + $0x258] sm:$0xff] }
 0x33a   : > { %3529 = vmatpush3.bf16.msra.mxu1 %v3528_v16  ;;  %v3594_v16 = vpack.c.bf16 %v2699_v14, %v2698_v13  ;;  %v2768_v13 = vld [vmem:[%s5488_s3 + $0x2e0] sm:$0xff]  ;;  %v2769_v14 = vld [vmem:[%s5488_s3 + $0x2e8] sm:$0xff] }
 0x33b   : > { %3531 = vmatprep.subr.bf16.mxu1 %v3530_v17  ;;  %v2682_v17 = vld [vmem:[%s5490_s5 + $0x170] sm:$0xff] }
 0x33c   : > { %v3596_v19 = vpack.c.bf16 %v2683_v18, %v2682_v17  ;;  %v2753_v17 = vld [vmem:[%s5488_s3 + $0x268] sm:$0xff] }
 0x33e   : > { %3533 = vmatpush3.bf16.msra.mxu1 %v3532_v20 }
 0x33f   : > { %3567 = vmatprep.subr.bf16.mxu1 %v3566_v38  ;;  %v2740_v38 = vld [vmem:[%s5488_s3 + $0x200] sm:$0xff] }
 0x340   : > { %v3632_v42 = vpack.c.bf16 %v2741_v40, %v2740_v38  ;;  %v2708_v38 = vld [vmem:[%s5486_s1 + $0x210] sm:$0xff]  ;;  %v2709_v40 = vld [vmem:[%s5486_s1 + $0x218] sm:$0xff] }
 0x341   : > { %968 = vmatmul.mubr.f32.vlgmr.msra.gmra.mrb[6].mxu1 %v4279_v33 }
 0x342   : > { %1189 = vmatprep.mubr.f32.mxu1 %v4238_v11  ;;  %3569 = vmatpush3.bf16.msra.mxu1 %v3568_v43 }
 0x343   : > { %3571 = vmatprep.subr.bf16.mxu1 %v3570_v44  ;;  %v2722_v44 = vld [vmem:[%s5486_s1 + $0x280] sm:$0xff] }
 0x344   : > { %v3598_v47 = vpack.c.bf16 %v2723_v45, %v2722_v44  ;;  %v2710_v44 = vld [vmem:[%s5486_s1 + $0x220] sm:$0xff]  ;;  %v2711_v45 = vld [vmem:[%s5486_s1 + $0x228] sm:$0xff] }
 0x346   : > { %3573 = vmatpush3.bf16.msra.mxu1 %v3572_v49  ;;  %v3634_v49 = vpack.c.bf16 %v2759_v48, %v2758_v46  ;;  %v2728_v46 = vld [vmem:[%s5486_s1 + $0x2b0] sm:$0xff] }
 0x347   : > { %3575 = vmatprep.subr.bf16.mxu1 %v3574_v39  ;;  %v2742_v39 = vld [vmem:[%s5488_s3 + $0x210] sm:$0xff] }
 0x348   : > { %v3636_v51 = vpack.c.bf16 %v2743_v50, %v2742_v39  ;;  %v2713_v39 = vld [vmem:[%s5486_s1 + $0x238] sm:$0xff]  ;;  %v2730_v50 = vld [vmem:[%s5486_s1 + $0x2c0] sm:$0xff] }
 0x34a   : > { %3577 = vmatpush3.bf16.msra.mxu1 %v3576_v54  ;;  %v3638_v54 = vpack.c.bf16 %v2761_v53, %v2760_v52 }
 0x34b   : > { %3579 = vmatprep.subr.bf16.mxu1 %v3578_v55  ;;  %v2744_v55 = vld [vmem:[%s5488_s3 + $0x220] sm:$0xff] }
 0x34c   : > { %v3640_v57 = vpack.c.bf16 %v2745_v56, %v2744_v55  ;;  %v2715_v55 = vld [vmem:[%s5486_s1 + $0x248] sm:$0xff]  ;;  %v2732_v56 = vld [vmem:[%s5486_s1 + $0x2d0] sm:$0xff] }
 0x34e   : > { %3581 = vmatpush3.bf16.msra.mxu1 %v3580_v60  ;;  %v3642_v60 = vpack.c.bf16 %v2763_v59, %v2762_v58 }
 0x34f   : > { %v3106_v21 = vpop.f32.mrb[4].mxu0  ;;  %3583 = vmatprep.subr.bf16.mxu1 %v3582_v61  ;;  %v2746_v61 = vld [vmem:[%s5488_s3 + $0x230] sm:$0xff] }
 0x350   : > { %v3107_v23 = vpop.f32.mrb[5].mxu0  ;;  %v3644_v63 = vpack.c.bf16 %v2747_v62, %v2746_v61  ;;  %v2717_v61 = vld [vmem:[%s5486_s1 + $0x258] sm:$0xff]  ;;  %v2734_v62 = vld [vmem:[%s5486_s1 + $0x2e0] sm:$0xff] }
 0x351   : > { %v3108_v24 = vadd.f32 %v3107_v23, %v3106_v21 }
 0x352   : > { %3585 = vmatpush3.bf16.msra.mxu1 %v3584_v2  ;;  %v3646_v2 = vpack.c.bf16 %v2765_v1, %v2764_v0 }
 0x353   : > { %v1081_v25 = vadd.f32 %v3108_v24, %v2667_v22  ;;  %3587 = vmatprep.subr.bf16.mxu1 %v3586_v3  ;;  %v2748_v3 = vld [vmem:[%s5488_s3 + $0x240] sm:$0xff] }
 0x354   : > { %v3648_v5 = vpack.c.bf16 %v2749_v4, %v2748_v3  ;;  %v2719_v3 = vld [vmem:[%s5486_s1 + $0x268] sm:$0xff]  ;;  %v2736_v4 = vld [vmem:[%s5486_s1 + $0x2f0] sm:$0xff] }
 0x355   : > { %3377 = vmatpush3.xpose.msk.msra.mxu0 %vm698_vm1, %v1081_v25 }
 0x356   : > { %3381 = vmatprep.subr.mxu0 %v3958_v34  ;;  %3589 = vmatpush3.bf16.msra.mxu1 %v3588_v8  ;;  %v3650_v8 = vpack.c.bf16 %v2767_v7, %v2766_v6 }
 0x357   : > { %3591 = vmatprep.subr.bf16.mxu1 %v3590_v9  ;;  %v2750_v9 = vld [vmem:[%s5488_s3 + $0x250] sm:$0xff] }
 0x358   : > { %v3652_v12 = vpack.c.bf16 %v2751_v10, %v2750_v9  ;;  %v2721_v9 = vld [vmem:[%s5486_s1 + $0x278] sm:$0xff] }
 0x35a   : > { %3593 = vmatpush3.bf16.msra.mxu1 %v3592_v15  ;;  %v3654_v15 = vpack.c.bf16 %v2769_v14, %v2768_v13  ;;  %v2773_v14 = vld [vmem:[%s5489_s4 + $0x2] ss:$0 sm:$0xff] }
 0x35b   : > { %3595 = vmatprep.subr.bf16.mxu1 %v3594_v16  ;;  %v2752_v16 = vld [vmem:[%s5488_s3 + $0x260] sm:$0xff] }
 0x35c   : > { %v3656_v18 = vpack.c.bf16 %v2753_v17, %v2752_v16 }
 0x35e   : > { %3597 = vmatpush3.bf16.msra.mxu1 %v3596_v19  ;;  %v2770_v19 = vld [vmem:[%s5488_s3 + $0x2f0] sm:$0xff] }
 0x361   : > { %1190 = vmatmul.mubr.f32.vlgmr.msra.gmra.mrb[8].mxu1 %v4279_v33 }
 0x362   : > { %1574 = vmatprep.mubr.f32.mxu1 %v4238_v11 }
 0x3f4   : > { %v4618_v26 = vpop.f32.mrb[4].mxu1 }
 0x3f5   : > { %v3375_v27 = vpop.f32.mrb[5].mxu1 }
 0x414   : > { %v3071_v28 = vpop.f32.mrb[6].mxu1 }
 0x415   : > { %v3072_v30 = vpop.f32.mrb[7].mxu1 }
 0x416   : > { %v3073_v31 = vadd.f32 %v3072_v30, %v3071_v28 }
 0x418   : > { %v970_v32 = vadd.f32 %v3073_v31, %v2633_v29 }
 0x41a   : > { %3379 = vmatmul.mubr.msk.f32.vlgmr.msra.gmra.mrb[6].mxu0 %vm698_vm1, %v970_v32  ;;  %v2756_v32 = vld [vmem:[%s5488_s3 + $0x280] sm:$0xff] }
 0x41b   : > { %3383 = vmatprep.mubr.msk.f32.mxu0 %vm3959_vm0, %v3958_v34  ;;  %v3630_v37 = vpack.c.bf16 %v2757_v35, %v2756_v32 }
 0x41d   : > { %3631 = vmatprep.subr.bf16.mxu1 %v3630_v37 }
 0x41e   : > { %3633 = vmatpush3.bf16.msra.mxu1 %v3632_v42  ;;  %v2727_v42 = vld [vmem:[%s5486_s1 + $0x2a8] sm:$0xff] }
 0x41f   : > { %3635 = vmatprep.subr.bf16.mxu1 %v3634_v49  ;;  %v2712_v49 = vld [vmem:[%s5486_s1 + $0x230] sm:$0xff] }
 0x420   : > { %v3612_v52 = vpack.c.bf16 %v2713_v39, %v2712_v49  ;;  %v2781_v49 = vld [vmem:[%s5490_s5 + $0x238] sm:$0xff]  ;;  %v2798_v39 = vld [vmem:[%s5490_s5 + $0x2c0] sm:$0xff] }
 0x422   : > { %3637 = vmatpush3.bf16.msra.mxu1 %v3636_v51  ;;  %v2731_v51 = vld [vmem:[%s5486_s1 + $0x2c8] sm:$0xff] }
 0x423   : > { %3639 = vmatprep.subr.bf16.mxu1 %v3638_v54  ;;  %v3614_v53 = vpack.c.bf16 %v2731_v51, %v2730_v50  ;;  %v2714_v54 = vld [vmem:[%s5486_s1 + $0x240] sm:$0xff]  ;;  %v2799_v50 = vld [vmem:[%s5490_s5 + $0x2c8] sm:$0xff] }
 0x424   : > { %v3616_v58 = vpack.c.bf16 %v2715_v55, %v2714_v54  ;;  %v2783_v54 = vld [vmem:[%s5490_s5 + $0x248] sm:$0xff]  ;;  %v2800_v55 = vld [vmem:[%s5490_s5 + $0x2d0] sm:$0xff] }
 0x426   : > { %3641 = vmatpush3.bf16.msra.mxu1 %v3640_v57  ;;  %v2733_v57 = vld [vmem:[%s5486_s1 + $0x2d8] sm:$0xff] }
 0x427   : > { %3643 = vmatprep.subr.bf16.mxu1 %v3642_v60  ;;  %v3618_v59 = vpack.c.bf16 %v2733_v57, %v2732_v56  ;;  %v2716_v60 = vld [vmem:[%s5486_s1 + $0x250] sm:$0xff]  ;;  %v2801_v56 = vld [vmem:[%s5490_s5 + $0x2d8] sm:$0xff] }
 0x428   : > { %v3620_v0 = vpack.c.bf16 %v2717_v61, %v2716_v60  ;;  %v2785_v60 = vld [vmem:[%s5490_s5 + $0x258] sm:$0xff]  ;;  %v2802_v61 = vld [vmem:[%s5490_s5 + $0x2e0] sm:$0xff] }
 0x42a   : > { %3645 = vmatpush3.bf16.msra.mxu1 %v3644_v63  ;;  %v2735_v63 = vld [vmem:[%s5486_s1 + $0x2e8] sm:$0xff] }
 0x42b   : > { %3647 = vmatprep.subr.bf16.mxu1 %v3646_v2  ;;  %v3622_v1 = vpack.c.bf16 %v2735_v63, %v2734_v62  ;;  %v2718_v2 = vld [vmem:[%s5486_s1 + $0x260] sm:$0xff]  ;;  %v2803_v62 = vld [vmem:[%s5490_s5 + $0x2e8] sm:$0xff] }
 0x42c   : > { %v3624_v6 = vpack.c.bf16 %v2719_v3, %v2718_v2  ;;  %v2787_v2 = vld [vmem:[%s5490_s5 + $0x268] sm:$0xff]  ;;  %v2804_v3 = vld [vmem:[%s5490_s5 + $0x2f0] sm:$0xff] }
 0x42e   : > { %3649 = vmatpush3.bf16.msra.mxu1 %v3648_v5  ;;  %v2737_v5 = vld [vmem:[%s5486_s1 + $0x2f8] sm:$0xff] }
 0x42f   : > { %3651 = vmatprep.subr.bf16.mxu1 %v3650_v8  ;;  %v3626_v7 = vpack.c.bf16 %v2737_v5, %v2736_v4  ;;  %v2720_v8 = vld [vmem:[%s5486_s1 + $0x270] sm:$0xff]  ;;  %v2805_v4 = vld [vmem:[%s5490_s5 + $0x2f8] sm:$0xff] }
 0x430   : > { %v3628_v10 = vpack.c.bf16 %v2721_v9, %v2720_v8  ;;  %v2789_v8 = vld [vmem:[%s5490_s5 + $0x278] sm:$0xff] }
 0x432   : > { %3653 = vmatpush3.bf16.msra.mxu1 %v3652_v12  ;;  %v4935_v12 = vld [vmem:[%s4220_s21 + $0x8] sm:$0xff] }
 0x433   : > { %3655 = vmatprep.subr.bf16.mxu1 %v3654_v15 }
 0x434   : > { %v3141_v30 = vpop.f32.mrb[8].mxu1 }
 0x435   : > { %v3142_v31 = vpop.f32.mrb[9].mxu1 }
 0x436   : > { %v3143_v36 = vadd.f32 %v3142_v31, %v3141_v30  ;;  %3657 = vmatpush3.bf16.msra.mxu1 %v3656_v18  ;;  %v2724_v30 = vld [vmem:[%s5486_s1 + $0x290] sm:$0xff]  ;;  %v2725_v31 = vld [vmem:[%s5486_s1 + $0x298] sm:$0xff] }
 0x437   : > { %v3602_v37 = vpack.c.bf16 %v2725_v31, %v2724_v30  ;;  %v2775_v30 = vld [vmem:[%s5490_s5 + $0x208] sm:$0xff]  ;;  %v2792_v31 = vld [vmem:[%s5490_s5 + $0x290] sm:$0xff] }
 0x438   : > { %v1192_v43 = vadd.f32 %v3143_v36, %v2701_v41  ;;  %v2726_v41 = vld [vmem:[%s5486_s1 + $0x2a0] sm:$0xff] }
 0x43a   : > { %3382 = vmatpush3.msra.mxu0 %v1192_v43  ;;  %v3606_v43 = vpack.c.bf16 %v2727_v42, %v2726_v41  ;;  %v2795_v41 = vld [vmem:[%s5490_s5 + $0x2a8] sm:$0xff] }
 0x43b   : > { %3599 = vmatprep.subr.bf16.mxu0 %v3598_v47  ;;  %v2729_v47 = vld [vmem:[%s5486_s1 + $0x2b8] sm:$0xff] }
 0x43c   : > { %v3610_v48 = vpack.c.bf16 %v2729_v47, %v2728_v46  ;;  %v2797_v46 = vld [vmem:[%s5490_s5 + $0x2b8] sm:$0xff] }
 0x4ed   : > { %v1267_v20 = vpop.f32.mrb[6].mxu0 }
 0x4ee   : > { %v1271_v21 = vmul.f32 0.5, %v1267_v20  ;;  %v3380_v22 = vpop.f32.mrb[7].mxu0  ;;  %v2771_v20 = vld [vmem:[%s5488_s3 + $0x2f8] sm:$0xff] }
 0x4ef   : > { %v2754_v22 = vld [vmem:[%s5488_s3 + $0x270] sm:$0xff] }
 0x4f0   : > { %2704 = vst.msk [vmem:[%s4400_s25 + $0x8] sm:$0xff] %vm776_vm2, %v1271_v21  ;;  %v1274_v23 = vsel %vm776_vm2, %v1271_v21, -inf }
 0x4f1   : > { %1275 = vmax.xlane.f32.xlu1 %v1274_v23  ;;  %v2755_v23 = vld [vmem:[%s5488_s3 + $0x278] sm:$0xff] }
 0x57e   : > { %v1276_v24 = vpop.xlane.xlu1 %1275 }
 0x57f   : > { %v1277_v25 = vsub.f32 %v1271_v21, %v1276_v24  ;;  %v3658_v21 = vpack.c.bf16 %v2771_v20, %v2770_v19  ;;  %v3660_v24 = vpack.c.bf16 %v2755_v23, %v2754_v22  ;;  %v2739_v20 = vld [vmem:[%s5487_s2 + $0x2] ss:$0 sm:$0xff] }
 0x581   : > { %v1278_v27 = vmul.f32 1.442695, %v1277_v25  ;;  %3659 = vmatprep.subr.bf16.mxu1 %v3658_v21 }
 0x582   : > { %3661 = vmatpush3.bf16.msra.mxu1 %v3660_v24  ;;  %v2790_v24 = vld [vmem:[%s5490_s5 + $0x280] sm:$0xff] }
 0x583   : > { %3848 = vpow2.f32 %v1278_v27  ;;  %3386 = vmatprep.subr.mxu1 %v3958_v34  ;;  %v2706_v27 = vld [vmem:[%s5486_s1 + $0x200] sm:$0xff] }
 0x585   : > { %1575 = vmatmul.mubr.f32.vlgmr.msra.gmra.mrb[10].mxu1 %v4279_v33 }
 0x586   : > { %3388 = vmatprep.mubr.msk.f32.mxu1 %vm3959_vm0, %v3958_v34 }
 0x58d   : > { %v4727_v28 = vpop.eup %3848 }
 0x58e   : > { %v1280_v29 = vsel %vm776_vm2, %v4727_v28, 0.0 }
 0x58f   : > { %1281 = vadd.xlane.f32.xlu1 %v1280_v29  ;;  %v2707_v29 = vld [vmem:[%s5486_s1 + $0x208] sm:$0xff] }
 0x590   : > { %v3600_v35 = vpack.c.bf16 %v2707_v29, %v2706_v27  ;;  %v2774_v27 = vld [vmem:[%s5490_s5 + $0x200] sm:$0xff] }
 0x61c   : > { %v1282_v25 = vpop.xlane.xlu1 %1281 }
 0x61d   : > { %3850 = vrcp.f32 %v1282_v25  ;;  %v2791_v25 = vld [vmem:[%s5490_s5 + $0x288] sm:$0xff] }
 0x61e   : > { %v3662_v29 = vpack.c.bf16 %v2791_v25, %v2790_v24  ;;  %v2862_v24 = vld [vmem:[%s5488_s3 + $0x380] sm:$0xff]  ;;  %v2863_v25 = vld [vmem:[%s5488_s3 + $0x388] sm:$0xff] }
 0x627   : > { %v3851_v32 = vpop.eup %3850 }
 0x628   : > { %v1284_v36 = vmul.f32 %v3851_v32, %v4727_v28  ;;  %v3604_v28 = vpack.c.bf16 %v2709_v40, %v2708_v38  ;;  %v2793_v32 = vld [vmem:[%s5490_s5 + $0x298] sm:$0xff]  ;;  %v2794_v40 = vld [vmem:[%s5490_s5 + $0x2a0] sm:$0xff] }
 0x629   : > { %v2777_v38 = vld [vmem:[%s5490_s5 + $0x218] sm:$0xff] }
 0x62a   : > { %3384 = vmatmul.mubr.msk.f32.vlgmr.msra.gmra.mrb[8].mxu0 %vm776_vm2, %v1284_v36  ;;  %v3666_v36 = vpack.c.bf16 %v2793_v32, %v2792_v31  ;;  %v2847_v31 = vld [vmem:[%s5488_s3 + $0x308] sm:$0xff]  ;;  %v2807_v32 = vld [vmem:[%s5491_s6 + $0x2] ss:$0 sm:$0xff] }
 0x62b   : > { %3601 = vmatpush3.bf16.msra.mxu0 %v3600_v35  ;;  %1463 = vmatprep.mubr.f32.mxu0 %v4238_v11  ;;  %v3608_v11 = vpack.c.bf16 %v2711_v45, %v2710_v44  ;;  %v3664_v35 = vpack.c.bf16 %v2775_v30, %v2774_v27  ;;  %v2779_v44 = vld [vmem:[%s5490_s5 + $0x228] sm:$0xff]  ;;  %v2796_v45 = vld [vmem:[%s5490_s5 + $0x2b0] sm:$0xff]  ;;  %v2846_v30 = vld [vmem:[%s5488_s3 + $0x300] sm:$0xff] }
 0x62c   : > { %3603 = vmatprep.subr.bf16.mxu0 %v3602_v37  ;;  %v2776_v37 = vld [vmem:[%s5490_s5 + $0x210] sm:$0xff] }
 0x62d   : > { %v3668_v42 = vpack.c.bf16 %v2777_v38, %v2776_v37  ;;  %v2828_v37 = vld [vmem:[%s5486_s1 + $0x380] sm:$0xff]  ;;  %v2829_v38 = vld [vmem:[%s5486_s1 + $0x388] sm:$0xff] }
 0x62f   : > { %3605 = vmatpush3.bf16.msra.mxu0 %v3604_v28  ;;  %v3670_v28 = vpack.c.bf16 %v2795_v41, %v2794_v40  ;;  %v2864_v40 = vld [vmem:[%s5488_s3 + $0x390] sm:$0xff]  ;;  %v3694_v41 = vpack.c.bf16 %v2829_v38, %v2828_v37  ;;  %v2816_v38 = vld [vmem:[%s5486_s1 + $0x320] sm:$0xff] }
 0x630   : > { %3607 = vmatprep.subr.bf16.mxu0 %v3606_v43  ;;  %v2778_v43 = vld [vmem:[%s5490_s5 + $0x220] sm:$0xff] }
 0x631   : > { %v3672_v47 = vpack.c.bf16 %v2779_v44, %v2778_v43  ;;  %v2848_v43 = vld [vmem:[%s5488_s3 + $0x310] sm:$0xff]  ;;  %v2849_v44 = vld [vmem:[%s5488_s3 + $0x318] sm:$0xff] }
 0x633   : > { %3609 = vmatpush3.bf16.msra.mxu0 %v3608_v11  ;;  %v3674_v11 = vpack.c.bf16 %v2797_v46, %v2796_v45  ;;  %v3732_v45 = vpack.c.bf16 %v2849_v44, %v2848_v43  ;;  %v2866_v46 = vld [vmem:[%s5488_s3 + $0x3a0] sm:$0xff]  ;;  %v2818_v44 = vld [vmem:[%s5486_s1 + $0x330] sm:$0xff] }
 0x634   : > { %3611 = vmatprep.subr.bf16.mxu0 %v3610_v48  ;;  %v2780_v48 = vld [vmem:[%s5490_s5 + $0x230] sm:$0xff] }
 0x635   : > { %v3676_v51 = vpack.c.bf16 %v2781_v49, %v2780_v48  ;;  %v2850_v48 = vld [vmem:[%s5488_s3 + $0x320] sm:$0xff]  ;;  %v2851_v49 = vld [vmem:[%s5488_s3 + $0x328] sm:$0xff] }
 0x637   : > { %3613 = vmatpush3.bf16.msra.mxu0 %v3612_v52  ;;  %v3678_v52 = vpack.c.bf16 %v2799_v50, %v2798_v39  ;;  %v3736_v39 = vpack.c.bf16 %v2851_v49, %v2850_v48  ;;  %v2868_v50 = vld [vmem:[%s5488_s3 + $0x3b0] sm:$0xff]  ;;  %v2820_v49 = vld [vmem:[%s5486_s1 + $0x340] sm:$0xff] }
 0x638   : > { %3615 = vmatprep.subr.bf16.mxu0 %v3614_v53  ;;  %v2782_v53 = vld [vmem:[%s5490_s5 + $0x240] sm:$0xff] }
 0x639   : > { %v3680_v57 = vpack.c.bf16 %v2783_v54, %v2782_v53  ;;  %v2852_v53 = vld [vmem:[%s5488_s3 + $0x330] sm:$0xff]  ;;  %v2853_v54 = vld [vmem:[%s5488_s3 + $0x338] sm:$0xff] }
 0x63b   : > { %3617 = vmatpush3.bf16.msra.mxu0 %v3616_v58  ;;  %v3682_v58 = vpack.c.bf16 %v2801_v56, %v2800_v55  ;;  %v3740_v55 = vpack.c.bf16 %v2853_v54, %v2852_v53  ;;  %v2870_v56 = vld [vmem:[%s5488_s3 + $0x3c0] sm:$0xff]  ;;  %v2822_v54 = vld [vmem:[%s5486_s1 + $0x350] sm:$0xff] }
 0x63c   : > { %3619 = vmatprep.subr.bf16.mxu0 %v3618_v59  ;;  %v2784_v59 = vld [vmem:[%s5490_s5 + $0x250] sm:$0xff] }
 0x63d   : > { %v3684_v63 = vpack.c.bf16 %v2785_v60, %v2784_v59  ;;  %v2854_v59 = vld [vmem:[%s5488_s3 + $0x340] sm:$0xff]  ;;  %v2855_v60 = vld [vmem:[%s5488_s3 + $0x348] sm:$0xff] }
 0x63f   : > { %3621 = vmatpush3.bf16.msra.mxu0 %v3620_v0  ;;  %v3686_v0 = vpack.c.bf16 %v2803_v62, %v2802_v61  ;;  %v3744_v61 = vpack.c.bf16 %v2855_v60, %v2854_v59  ;;  %v2872_v62 = vld [vmem:[%s5488_s3 + $0x3d0] sm:$0xff]  ;;  %v2824_v60 = vld [vmem:[%s5486_s1 + $0x360] sm:$0xff] }
 0x640   : > { %3623 = vmatprep.subr.bf16.mxu0 %v3622_v1  ;;  %v2786_v1 = vld [vmem:[%s5490_s5 + $0x260] sm:$0xff] }
 0x641   : > { %v3688_v5 = vpack.c.bf16 %v2787_v2, %v2786_v1  ;;  %v2856_v1 = vld [vmem:[%s5488_s3 + $0x350] sm:$0xff]  ;;  %v2857_v2 = vld [vmem:[%s5488_s3 + $0x358] sm:$0xff] }
 0x643   : > { %3625 = vmatpush3.bf16.msra.mxu0 %v3624_v6  ;;  %v3690_v6 = vpack.c.bf16 %v2805_v4, %v2804_v3  ;;  %v3748_v3 = vpack.c.bf16 %v2857_v2, %v2856_v1  ;;  %v2874_v4 = vld [vmem:[%s5488_s3 + $0x3e0] sm:$0xff]  ;;  %v2826_v2 = vld [vmem:[%s5486_s1 + $0x370] sm:$0xff] }
 0x644   : > { %3627 = vmatprep.subr.bf16.mxu0 %v3626_v7  ;;  %v2788_v7 = vld [vmem:[%s5490_s5 + $0x270] sm:$0xff] }
 0x645   : > { %v3692_v9 = vpack.c.bf16 %v2789_v8, %v2788_v7  ;;  %v2858_v7 = vld [vmem:[%s5488_s3 + $0x360] sm:$0xff]  ;;  %v2859_v8 = vld [vmem:[%s5488_s3 + $0x368] sm:$0xff] }
 0x647   : > { %3629 = vmatpush3.bf16.msra.mxu0 %v3628_v10  ;;  %v5048_v10 = vld [vmem:[%s4220_s21] sm:$0xff]  ;;  %s5407_s21 = scalar_lea.hbm %s5495_s10, %s2929_s22 }
 0x648   : > { %3663 = vmatprep.subr.bf16.mxu0 %v3662_v29  ;;  %v3726_v29 = vpack.c.bf16 %v2863_v25, %v2862_v24  ;;  %v2831_v24 = vld [vmem:[%s5486_s1 + $0x398] sm:$0xff] }
 0x64a   : > { %1464 = vmatmul.mubr.f32.vlgmr.msra.gmra.mrb[10].mxu0 %v4279_v33 }
 0x64b   : > { %1685 = vmatprep.mubr.f32.mxu0 %v4935_v12  ;;  %3665 = vmatpush3.bf16.msra.mxu0 %v3664_v35  ;;  %v3728_v35 = vpack.c.bf16 %v2847_v31, %v2846_v30  ;;  %v2814_v31 = vld [vmem:[%s5486_s1 + $0x310] sm:$0xff] }
 0x64c   : > { %3667 = vmatprep.subr.bf16.mxu0 %v3666_v36 }
 0x64f   : > { %3669 = vmatpush3.bf16.msra.mxu0 %v3668_v42  ;;  %v2865_v42 = vld [vmem:[%s5488_s3 + $0x398] sm:$0xff] }
 0x650   : > { %3671 = vmatprep.subr.bf16.mxu0 %v3670_v28  ;;  %v3730_v28 = vpack.c.bf16 %v2865_v42, %v2864_v40  ;;  %v2817_v40 = vld [vmem:[%s5486_s1 + $0x328] sm:$0xff]  ;;  %v2835_v42 = vld [vmem:[%s5486_s1 + $0x3b8] sm:$0xff] }
 0x653   : > { %3673 = vmatpush3.bf16.msra.mxu0 %v3672_v47  ;;  %v2867_v47 = vld [vmem:[%s5488_s3 + $0x3a8] sm:$0xff] }
 0x654   : > { %3675 = vmatprep.subr.bf16.mxu0 %v3674_v11  ;;  %v3734_v11 = vpack.c.bf16 %v2867_v47, %v2866_v46  ;;  %v2836_v46 = vld [vmem:[%s5486_s1 + $0x3c0] sm:$0xff]  ;;  %v2837_v47 = vld [vmem:[%s5486_s1 + $0x3c8] sm:$0xff] }
 0x655   : > { %v3710_v48 = vpack.c.bf16 %v2837_v47, %v2836_v46  ;;  %v2904_v46 = vld [vmem:[%s5490_s5 + $0x3c0] sm:$0xff]  ;;  %v2905_v47 = vld [vmem:[%s5490_s5 + $0x3c8] sm:$0xff] }
 0x657   : > { %3677 = vmatpush3.bf16.msra.mxu0 %v3676_v51  ;;  %v2869_v51 = vld [vmem:[%s5488_s3 + $0x3b8] sm:$0xff] }
 0x658   : > { %v3215_v13 = vpop.f32.mrb[10].mxu1  ;;  %3679 = vmatprep.subr.bf16.mxu0 %v3678_v52  ;;  %v3738_v52 = vpack.c.bf16 %v2869_v51, %v2868_v50  ;;  %v2838_v50 = vld [vmem:[%s5486_s1 + $0x3d0] sm:$0xff]  ;;  %v2839_v51 = vld [vmem:[%s5486_s1 + $0x3d8] sm:$0xff] }
 0x659   : > { %v3216_v15 = vpop.f32.mrb[11].mxu1  ;;  %v3714_v53 = vpack.c.bf16 %v2839_v51, %v2838_v50  ;;  %v2906_v50 = vld [vmem:[%s5490_s5 + $0x3d0] sm:$0xff]  ;;  %v2907_v51 = vld [vmem:[%s5490_s5 + $0x3d8] sm:$0xff] }
 0x65a   : > { %v3217_v16 = vadd.f32 %v3216_v15, %v3215_v13 }
 0x65b   : > { %3681 = vmatpush3.bf16.msra.mxu0 %v3680_v57  ;;  %v2871_v57 = vld [vmem:[%s5488_s3 + $0x3c8] sm:$0xff] }
 0x65c   : > { %v1577_v17 = vadd.f32 %v3217_v16, %v2773_v14  ;;  %3683 = vmatprep.subr.bf16.mxu0 %v3682_v58  ;;  %v3742_v58 = vpack.c.bf16 %v2871_v57, %v2870_v56  ;;  %v2840_v56 = vld [vmem:[%s5486_s1 + $0x3e0] sm:$0xff]  ;;  %v2841_v57 = vld [vmem:[%s5486_s1 + $0x3e8] sm:$0xff] }
 0x65d   : > { %v3718_v59 = vpack.c.bf16 %v2841_v57, %v2840_v56  ;;  %v2908_v56 = vld [vmem:[%s5490_s5 + $0x3e0] sm:$0xff]  ;;  %v2909_v57 = vld [vmem:[%s5490_s5 + $0x3e8] sm:$0xff] }
 0x65e   : > { %3387 = vmatpush3.xpose.msk.msra.mxu1 %vm698_vm1, %v1577_v17 }
 0x65f   : > { %3391 = vmatprep.subr.mxu1 %v3958_v34  ;;  %3685 = vmatpush3.bf16.msra.mxu0 %v3684_v63  ;;  %v2873_v63 = vld [vmem:[%s5488_s3 + $0x3d8] sm:$0xff] }
 0x660   : > { %3687 = vmatprep.subr.bf16.mxu0 %v3686_v0  ;;  %v3746_v0 = vpack.c.bf16 %v2873_v63, %v2872_v62  ;;  %v2842_v62 = vld [vmem:[%s5486_s1 + $0x3f0] sm:$0xff]  ;;  %v2843_v63 = vld [vmem:[%s5486_s1 + $0x3f8] sm:$0xff] }
 0x661   : > { %v3722_v1 = vpack.c.bf16 %v2843_v63, %v2842_v62  ;;  %v2910_v62 = vld [vmem:[%s5490_s5 + $0x3f0] sm:$0xff]  ;;  %v2911_v63 = vld [vmem:[%s5490_s5 + $0x3f8] sm:$0xff] }
 0x663   : > { %3689 = vmatpush3.bf16.msra.mxu0 %v3688_v5  ;;  %v2875_v5 = vld [vmem:[%s5488_s3 + $0x3e8] sm:$0xff] }
 0x664   : > { %3691 = vmatprep.subr.bf16.mxu0 %v3690_v6  ;;  %v3750_v6 = vpack.c.bf16 %v2875_v5, %v2874_v4 }
 0x667   : > { %3693 = vmatpush3.bf16.msra.mxu0 %v3692_v9  ;;  %v3752_v9 = vpack.c.bf16 %v2859_v8, %v2858_v7 }
 0x668   : > { %3727 = vmatprep.subr.bf16.mxu0 %v3726_v29 }
 0x66a   : > { %1686 = vmatmul.mubr.f32.vlgmr.msra.gmra.mrb[12].mxu0 %v5048_v10 }
 0x66b   : > { %2070 = vmatprep.mubr.f32.mxu0 %v4935_v12  ;;  %3729 = vmatpush3.bf16.msra.mxu0 %v3728_v35  ;;  %v2832_v35 = vld [vmem:[%s5486_s1 + $0x3a0] sm:$0xff] }
 0x66c   : > { %3731 = vmatprep.subr.bf16.mxu0 %v3730_v28  ;;  %v3704_v28 = vpack.c.bf16 %v2817_v40, %v2816_v38  ;;  %v2884_v38 = vld [vmem:[%s5490_s5 + $0x320] sm:$0xff]  ;;  %v2885_v40 = vld [vmem:[%s5490_s5 + $0x328] sm:$0xff] }
 0x66f   : > { %3733 = vmatpush3.bf16.msra.mxu0 %v3732_v45  ;;  %v2819_v45 = vld [vmem:[%s5486_s1 + $0x338] sm:$0xff] }
 0x670   : > { %3735 = vmatprep.subr.bf16.mxu0 %v3734_v11  ;;  %v3708_v11 = vpack.c.bf16 %v2819_v45, %v2818_v44  ;;  %v2886_v44 = vld [vmem:[%s5490_s5 + $0x330] sm:$0xff]  ;;  %v2887_v45 = vld [vmem:[%s5490_s5 + $0x338] sm:$0xff] }
 0x673   : > { %3737 = vmatpush3.bf16.msra.mxu0 %v3736_v39  ;;  %v2821_v39 = vld [vmem:[%s5486_s1 + $0x348] sm:$0xff] }
 0x674   : > { %3739 = vmatprep.subr.bf16.mxu0 %v3738_v52  ;;  %v3712_v52 = vpack.c.bf16 %v2821_v39, %v2820_v49  ;;  %v2888_v49 = vld [vmem:[%s5490_s5 + $0x340] sm:$0xff]  ;;  %v2889_v39 = vld [vmem:[%s5490_s5 + $0x348] sm:$0xff] }
 0x677   : > { %3741 = vmatpush3.bf16.msra.mxu0 %v3740_v55  ;;  %v2823_v55 = vld [vmem:[%s5486_s1 + $0x358] sm:$0xff] }
 0x678   : > { %3743 = vmatprep.subr.bf16.mxu0 %v3742_v58  ;;  %v3716_v58 = vpack.c.bf16 %v2823_v55, %v2822_v54  ;;  %v2890_v54 = vld [vmem:[%s5490_s5 + $0x350] sm:$0xff]  ;;  %v2891_v55 = vld [vmem:[%s5490_s5 + $0x358] sm:$0xff] }
 0x67b   : > { %3745 = vmatpush3.bf16.msra.mxu0 %v3744_v61  ;;  %v2825_v61 = vld [vmem:[%s5486_s1 + $0x368] sm:$0xff] }
 0x67c   : > { %3747 = vmatprep.subr.bf16.mxu0 %v3746_v0  ;;  %v3720_v0 = vpack.c.bf16 %v2825_v61, %v2824_v60  ;;  %v2892_v60 = vld [vmem:[%s5490_s5 + $0x360] sm:$0xff]  ;;  %v2893_v61 = vld [vmem:[%s5490_s5 + $0x368] sm:$0xff] }
 0x67f   : > { %3749 = vmatpush3.bf16.msra.mxu0 %v3748_v3  ;;  %v2827_v3 = vld [vmem:[%s5486_s1 + $0x378] sm:$0xff] }
 0x680   : > { %3751 = vmatprep.subr.bf16.mxu0 %v3750_v6  ;;  %v3724_v4 = vpack.c.bf16 %v2827_v3, %v2826_v2  ;;  %v2879_v6 = vld [vmem:[%s5489_s4 + $0x3] ss:$0 sm:$0xff]  ;;  %v2894_v2 = vld [vmem:[%s5490_s5 + $0x370] sm:$0xff]  ;;  %v2895_v3 = vld [vmem:[%s5490_s5 + $0x378] sm:$0xff] }
 0x683   : > { %3753 = vmatpush3.bf16.msra.mxu0 %v3752_v9 }
 0x6fd   : > { %v4943_v18 = vpop.f32.mrb[8].mxu0 }
 0x6fe   : > { %v3385_v19 = vpop.f32.mrb[9].mxu0 }
 0x71d   : > { %v3180_v33 = vpop.f32.mrb[10].mxu0 }
 0x71e   : > { %v3181_v21 = vpop.f32.mrb[11].mxu0 }
 0x71f   : > { %v3182_v22 = vadd.f32 %v3181_v21, %v3180_v33 }
 0x721   : > { %v1466_v23 = vadd.f32 %v3182_v22, %v2739_v20 }
 0x723   : > { %3389 = vmatmul.mubr.msk.f32.vlgmr.msra.gmra.mrb[12].mxu1 %vm698_vm1, %v1466_v23 }
 0x724   : > { %3393 = vmatprep.mubr.msk.f32.mxu1 %vm3959_vm0, %v3958_v34 }
 0x73d   : > { %v3250_v22 = vpop.f32.mrb[12].mxu0 }
 0x73e   : > { %v3251_v23 = vpop.f32.mrb[13].mxu0 }
 0x73f   : > { %v3252_v27 = vadd.f32 %v3251_v23, %v3250_v22  ;;  %v2813_v22 = vld [vmem:[%s5486_s1 + $0x308] sm:$0xff]  ;;  %v2830_v23 = vld [vmem:[%s5486_s1 + $0x390] sm:$0xff] }
 0x740   : > { %v3698_v30 = vpack.c.bf16 %v2831_v24, %v2830_v23  ;;  %v2881_v24 = vld [vmem:[%s5490_s5 + $0x308] sm:$0xff] }
 0x741   : > { %v1688_v36 = vadd.f32 %v3252_v27, %v2807_v32  ;;  %v2815_v32 = vld [vmem:[%s5486_s1 + $0x318] sm:$0xff] }
 0x743   : > { %3392 = vmatpush3.msra.mxu1 %v1688_v36  ;;  %v2833_v36 = vld [vmem:[%s5486_s1 + $0x3a8] sm:$0xff] }
 0x744   : > { %3695 = vmatprep.subr.bf16.mxu1 %v3694_v41  ;;  %v3702_v37 = vpack.c.bf16 %v2833_v36, %v2832_v35  ;;  %v2834_v41 = vld [vmem:[%s5486_s1 + $0x3b0] sm:$0xff]  ;;  %v2900_v35 = vld [vmem:[%s5490_s5 + $0x3a0] sm:$0xff]  ;;  %v2901_v36 = vld [vmem:[%s5490_s5 + $0x3a8] sm:$0xff] }
 0x745   : > { %v3706_v43 = vpack.c.bf16 %v2835_v42, %v2834_v41  ;;  %v2902_v41 = vld [vmem:[%s5490_s5 + $0x3b0] sm:$0xff]  ;;  %v2903_v42 = vld [vmem:[%s5490_s5 + $0x3b8] sm:$0xff] }
 0x7f6   : > { %v1763_v13 = vpop.f32.mrb[12].mxu1 }
 0x7f7   : > { %v1767_v14 = vmul.f32 0.5, %v1763_v13  ;;  %v3390_v15 = vpop.f32.mrb[13].mxu1  ;;  %v2876_v13 = vld [vmem:[%s5488_s3 + $0x3f0] sm:$0xff] }
 0x7f9   : > { %2810 = vst.msk [vmem:[%s4400_s25 + $0x10] sm:$0xff] %vm776_vm2, %v1767_v14  ;;  %v1770_v16 = vsel %vm776_vm2, %v1767_v14, -inf }
 0x7fa   : > { %1771 = vmax.xlane.f32.xlu0 %v1770_v16  ;;  %v2860_v16 = vld [vmem:[%s5488_s3 + $0x370] sm:$0xff] }
 0x887   : > { %v1772_v17 = vpop.xlane.xlu0 %1771 }
 0x888   : > { %v1773_v19 = vsub.f32 %v1767_v14, %v1772_v17  ;;  %v2877_v14 = vld [vmem:[%s5488_s3 + $0x3f8] sm:$0xff] }
 0x889   : > { %v3754_v15 = vpack.c.bf16 %v2877_v14, %v2876_v13  ;;  %v2861_v17 = vld [vmem:[%s5488_s3 + $0x378] sm:$0xff] }
 0x88a   : > { %v1774_v33 = vmul.f32 1.442695, %v1773_v19  ;;  %v3756_v19 = vpack.c.bf16 %v2861_v17, %v2860_v16 }
 0x88b   : > { %3755 = vmatprep.subr.bf16.mxu0 %v3754_v15 }
 0x88c   : > { %3852 = vpow2.f32 %v1774_v33  ;;  %3757 = vmatpush3.bf16.msra.mxu0 %v3756_v19 }
 0x88d   : > { %3396 = vmatprep.subr.mxu0 %v3958_v34 }
 0x88f   : > { %2071 = vmatmul.mubr.f32.vlgmr.msra.gmra.mrb[14].mxu0 %v5048_v10 }
 0x890   : > { %3398 = vmatprep.mubr.msk.f32.mxu0 %vm3959_vm0, %v3958_v34 }
 0x896   : > { %v5055_v20 = vpop.eup %3852 }
 0x897   : > { %v1776_v21 = vsel %vm776_vm2, %v5055_v20, 0.0 }
 0x898   : > { %1777 = vadd.xlane.f32.xlu1 %v1776_v21  ;;  %v2812_v21 = vld [vmem:[%s5486_s1 + $0x300] sm:$0xff] }
 0x899   : > { %v3696_v27 = vpack.c.bf16 %v2813_v22, %v2812_v21  ;;  %v2897_v21 = vld [vmem:[%s5490_s5 + $0x388] sm:$0xff]  ;;  %v2880_v22 = vld [vmem:[%s5490_s5 + $0x300] sm:$0xff] }
 0x925   : > { %v1778_v33 = vpop.xlane.xlu1 %1777 }
 0x926   : > { %3854 = vrcp.f32 %v1778_v33  ;;  %v2896_v33 = vld [vmem:[%s5490_s5 + $0x380] sm:$0xff] }
 0x927   : > { %v3758_v23 = vpack.c.bf16 %v2897_v21, %v2896_v33  ;;  %v2913_v33 = vld [vmem:[%s5491_s6 + $0x3] ss:$0 sm:$0xff] }
 0x930   : > { %v3855_v25 = vpop.eup %3854 }
 0x931   : > { %v1780_v29 = vmul.f32 %v3855_v25, %v5055_v20  ;;  %v3700_v20 = vpack.c.bf16 %v2815_v32, %v2814_v31  ;;  %v2898_v25 = vld [vmem:[%s5490_s5 + $0x390] sm:$0xff]  ;;  %v2883_v32 = vld [vmem:[%s5490_s5 + $0x318] sm:$0xff] }
 0x932   : > { %v2882_v31 = vld [vmem:[%s5490_s5 + $0x310] sm:$0xff] }
 0x933   : > { %3394 = vmatmul.mubr.msk.f32.vlgmr.msra.gmra.mrb[14].mxu1 %vm776_vm2, %v1780_v29  ;;  %v3760_v29 = vpack.c.bf16 %v2881_v24, %v2880_v22  ;;  %v2369_v24 = vld [vmem:[%s5492_s7 + $0x18] sm:$0xff] }
 0x934   : > { %3697 = vmatpush3.bf16.msra.mxu1 %v3696_v27  ;;  %1959 = vmatprep.mubr.f32.mxu1 %v4935_v12  ;;  %v2899_v27 = vld [vmem:[%s5490_s5 + $0x398] sm:$0xff] }
 0x935   : > { %3699 = vmatprep.subr.bf16.mxu1 %v3698_v30  ;;  %v3762_v30 = vpack.c.bf16 %v2899_v27, %v2898_v25  ;;  %v2366_v25 = vld [vmem:[%s5492_s7] sm:$0xff] }
 0x938   : > { %3701 = vmatpush3.bf16.msra.mxu1 %v3700_v20  ;;  %v3764_v20 = vpack.c.bf16 %v2883_v32, %v2882_v31 }
 0x939   : > { %3703 = vmatprep.subr.bf16.mxu1 %v3702_v37  ;;  %v3766_v37 = vpack.c.bf16 %v2901_v36, %v2900_v35 }
 0x93c   : > { %3705 = vmatpush3.bf16.msra.mxu1 %v3704_v28  ;;  %v3768_v28 = vpack.c.bf16 %v2885_v40, %v2884_v38 }
 0x93d   : > { %3707 = vmatprep.subr.bf16.mxu1 %v3706_v43  ;;  %v3770_v43 = vpack.c.bf16 %v2903_v42, %v2902_v41 }
 0x940   : > { %3709 = vmatpush3.bf16.msra.mxu1 %v3708_v11  ;;  %v3772_v11 = vpack.c.bf16 %v2887_v45, %v2886_v44 }
 0x941   : > { %3711 = vmatprep.subr.bf16.mxu1 %v3710_v48  ;;  %v3774_v48 = vpack.c.bf16 %v2905_v47, %v2904_v46 }
 0x944   : > { %3713 = vmatpush3.bf16.msra.mxu1 %v3712_v52  ;;  %v3776_v52 = vpack.c.bf16 %v2889_v39, %v2888_v49 }
 0x945   : > { %3715 = vmatprep.subr.bf16.mxu1 %v3714_v53  ;;  %v3778_v53 = vpack.c.bf16 %v2907_v51, %v2906_v50 }
 0x948   : > { %3717 = vmatpush3.bf16.msra.mxu1 %v3716_v58  ;;  %v3780_v58 = vpack.c.bf16 %v2891_v55, %v2890_v54 }
 0x949   : > { %3719 = vmatprep.subr.bf16.mxu1 %v3718_v59  ;;  %v3782_v59 = vpack.c.bf16 %v2909_v57, %v2908_v56 }
 0x94c   : > { %3721 = vmatpush3.bf16.msra.mxu1 %v3720_v0  ;;  %v3784_v0 = vpack.c.bf16 %v2893_v61, %v2892_v60 }
 0x94d   : > { %3723 = vmatprep.subr.bf16.mxu1 %v3722_v1  ;;  %v3786_v1 = vpack.c.bf16 %v2911_v63, %v2910_v62 }
 0x950   : > { %3725 = vmatpush3.bf16.msra.mxu1 %v3724_v4  ;;  %v3788_v4 = vpack.c.bf16 %v2895_v3, %v2894_v2 }
 0x951   : > { %3759 = vmatprep.subr.bf16.mxu1 %v3758_v23 }
 0x953   : > { %1960 = vmatmul.mubr.f32.vlgmr.msra.gmra.mrb[16].mxu1 %v5048_v10 }
 0x954   : > { %2181 = vmatprep.mubr.f32.mxu1 %v4935_v12  ;;  %v2845_v12 = vld [vmem:[%s5487_s2 + $0x3] ss:$0 sm:$0xff]  ;;  %3761 = vmatpush3.bf16.msra.mxu1 %v3760_v29  ;;  %v2368_v29 = vld [vmem:[%s5492_s7 + $0x10] sm:$0xff] }
 0x955   : > { %3763 = vmatprep.subr.bf16.mxu1 %v3762_v30  ;;  %v3792_v30 = vpack.c.bf16 %v2368_v29, %v2366_v25 }
 0x958   : > { %3765 = vmatpush3.bf16.msra.mxu1 %v3764_v20 }
 0x959   : > { %3767 = vmatprep.subr.bf16.mxu1 %v3766_v37 }
 0x95c   : > { %3769 = vmatpush3.bf16.msra.mxu1 %v3768_v28 }
 0x95d   : > { %3771 = vmatprep.subr.bf16.mxu1 %v3770_v43 }
 0x960   : > { %3773 = vmatpush3.bf16.msra.mxu1 %v3772_v11 }
 0x961   : > { %3775 = vmatprep.subr.bf16.mxu1 %v3774_v48 }
 0x962   : > { %v3324_v5 = vpop.f32.mrb[14].mxu0 }
 0x963   : > { %v3325_v7 = vpop.f32.mrb[15].mxu0 }
 0x964   : > { %v3326_v8 = vadd.f32 %v3325_v7, %v3324_v5  ;;  %3777 = vmatpush3.bf16.msra.mxu1 %v3776_v52 }
 0x965   : > { %3779 = vmatprep.subr.bf16.mxu1 %v3778_v53 }
 0x966   : > { %v2073_v9 = vadd.f32 %v3326_v8, %v2879_v6 }
 0x968   : > { %3397 = vmatpush3.xpose.msk.msra.mxu0 %vm698_vm1, %v2073_v9  ;;  %3781 = vmatpush3.bf16.msra.mxu1 %v3780_v58 }
 0x969   : > { %3401 = vmatprep.subr.mxu0 %v3958_v34  ;;  %3783 = vmatprep.subr.bf16.mxu1 %v3782_v59 }
 0x96c   : > { %3785 = vmatpush3.bf16.msra.mxu1 %v3784_v0 }
 0x96d   : > { %3787 = vmatprep.subr.bf16.mxu1 %v3786_v1 }
 0x970   : > { %3789 = vmatpush3.bf16.msra.mxu1 %v3788_v4 }
 0x973   : > { %2182 = vmatmul.mubr.f32.vlgmr.msra.gmra.mrb[18].mxu1 %v5048_v10 }
 0xa06   : > { %v5268_v13 = vpop.f32.mrb[14].mxu1 }
 0xa07   : > { %v3395_v14 = vpop.f32.mrb[15].mxu1 }
 0xa26   : > { %v3289_v15 = vpop.f32.mrb[16].mxu1 }
 0xa27   : > { %v3290_v16 = vpop.f32.mrb[17].mxu1 }
 0xa28   : > { %v3291_v17 = vadd.f32 %v3290_v16, %v3289_v15 }
 0xa2a   : > { %v1962_v19 = vadd.f32 %v3291_v17, %v2845_v12 }
 0xa2c   : > { %3399 = vmatmul.mubr.msk.f32.vlgmr.msra.gmra.mrb[16].mxu0 %vm698_vm1, %v1962_v19 }
 0xa2d   : > { %3403 = vmatprep.mubr.msk.f32.mxu0 %vm3959_vm0, %v3958_v34 }
 0xa46   : > { %v3359_v10 = vpop.f32.mrb[18].mxu1 }
 0xa47   : > { %v3360_v17 = vpop.f32.mrb[19].mxu1 }
 0xa48   : > { %v3361_v19 = vadd.f32 %v3360_v17, %v3359_v10 }
 0xaff   : > { %v2259_v5 = vpop.f32.mrb[16].mxu0 }
 0xb00   : > { %v2263_v6 = vmul.f32 0.5, %v2259_v5  ;;  %v3400_v7 = vpop.f32.mrb[17].mxu0 }
 0xb02   : > { %2916 = vst.msk [vmem:[%s4400_s25 + $0x18] sm:$0xff] %vm776_vm2, %v2263_v6  ;;  %v2266_v8 = vsel %vm776_vm2, %v2263_v6, -inf  ;;  %s3868_s25 = scalar_lea.vmem %s3867_s26, 1024 }
 0xb03   : > { %2267 = vmax.xlane.f32.xlu0 %v2266_v8  ;;  %p3870_p1 = scmp.lt.s32.totalorder %s3868_s25, %s3862_s12 }
 0xb05   : > { %p3871_p2 = por %p3870_p1, %p3869_p0 }
 0xb07   : > { %p3872_p3 = pnand %p3871_p2, %p3865_p13 }
 0xb19   : > { %2351 = vrot.lane.b32.xlu0 %v4943_v18, %s3960_s27  ;;  %v2184_v18 = vadd.f32 %v3361_v19, %v2913_v33  ;;  %s3962_s27 = smov 12  }
 0xb1b   : > { %3402 = vmatpush3.msra.mxu0 %v2184_v18 }
 0xb90   : > { %v2268_v9 = vpop.xlane.xlu0 %2267 }
 0xb91   : > { %v2269_v14 = vsub.f32 %v2263_v6, %v2268_v9 }
 0xb93   : > { %v2270_v15 = vmul.f32 1.442695, %v2269_v14 }
 0xb94   : > { %v2352_v32 = vpop.permute.xlu0 %2351 }
 0xb95   : > { %3856 = vpow2.f32 %v2270_v15  ;;  %v2362_v36 = vsel %vm698_vm1, %v4618_v26, %v2352_v32 }
 0xb9f   : > { %v3857_v12 = vpop.eup %3856 }
 0xba0   : > { %v2272_v16 = vsel %vm776_vm2, %v3857_v12, 0.0 }
 0xba1   : > { %2273 = vadd.xlane.f32.xlu1 %v2272_v16 }
 0xbb2   : > { %2355 = vrot.lane.b32.xlu1 %v5268_v13, %s3961_s28  ;;  %v2367_v13 = vld [vmem:[%s5492_s7 + $0x8] sm:$0xff] }
 0xbb3   : > { %v3790_v27 = vpack.c.bf16 %v2369_v24, %v2367_v13 }
 0xbb5   : > { %3791 = vmatprep.subr.bf16.mxu0 %v3790_v27 }
 0xc2e   : > { %v2274_v21 = vpop.xlane.xlu1 %2273 }
 0xc2f   : > { %3858 = vrcp.f32 %v2274_v21 }
 0xc32   : > { %v2356_v35 = vpop.permute.xlu1 %2355 }
 0xc33   : > { %v2363_v20 = vsel %vm776_vm2, %v2362_v36, %v2356_v35 }
 0xc39   : > { %v3859_v22 = vpop.eup %3858 }
 0xc3a   : > { %v2276_v23 = vmul.f32 %v3859_v22, %v3857_v12 }
 0xc3c   : > { %3404 = vmatmul.mubr.msk.f32.vlgmr.msra.gmra.mrb[18].mxu0 %vm776_vm2, %v2276_v23 }
 0xc3d   : > { %2450 = vmatprep.mubr.f32.mxu0 %v3958_v34  ;;  %3793 = vmatpush1.bf16.msra.mxu0 %v3792_v30 }
 0xd0f   : > { %v2346_v34 = vpop.f32.mrb[18].mxu0 }
 0xd10   : > { %2359 = vrot.lane.b32.xlu1 %v2346_v34, %s3962_s27  ;;  %v3405_v31 = vpop.f32.mrb[19].mxu0 }
 0xd82   : > { %v2360_v37 = vpop.permute.xlu1 %2359 }
 0xd83   : > { %v2365_v38 = vsel %vm2364_vm3, %v2363_v20, %v2360_v37 }
 0xd84   : > { %2918 = vmatmul.mubr.msk.f32.vlgmr.msra.gmra.mrb[20].mxu0 %vm2382_vm4, %v2365_v38 }
 0xd85   : > { %3875 = shalt.err (!%p3872_p3)
}
 0xd86   : > { %s3876_s0 = scalar_lea.hbm %s5407_s21, 512  ;;  %s3880_s11 = scalar_lea.hbm %s5495_s10, 1024 }
 0xd87   : > { %p3877_p4 = scmp.ne.s32.totalorder %s5407_s21, %s3876_s0  ;;  %p3881_p9 = scmp.lt.u32.totalorder %s5407_s21, %s5495_s10 }
 0xd88   : > { %p3882_p10 = scmp.lt.u32.totalorder %s3880_s11, %s3876_s0  ;;  %p3884_p12 = scmp.lt.u32.totalorder %s3876_s0, %s5407_s21 }
 0xd89   : > { %p3878_p7 = pnand %p3877_p4, %p4059_p5 }
 0xd8a   : > { %p3883_p11 = por %p3882_p10, %p3881_p9 }
 0xd8b   : > { %p3879_p8 = pneg %p3878_p7 }
 0xd8c   : > { %p3885_p13 = por %p3884_p12, %p3883_p11 }
 0xd8e   : > { %p3886_p0 = pnand %p3885_p13, %p3879_p8 }
 0xd90   : > { %3889 = shalt.err (!%p3886_p0)
}
 0xd91   : > { %s3964_s12 = smov 128   ;;  %v2372_v26 = vlaneseq  ;;  %s2590_s26 = sshll.u32 %s4397_s29, 4  ;;  %v2370_v42 = vld [vmem:[%s5493_s8] sm:$0x3] }
 0xd92   : > { %3795 = dma.vmem_to_hbm [thread:$0]  (%p4059_p5), %s5401_s30, 512, %s5407_s21, %s2465_s15, %s3964_s12, %s3964_s12, %s3961_s28  }
 0xd93   : > { %v2373_v40 = vshrl.u32 %v2372_v26, 7  ;;  %s2928_s27 = sshll.u32 %s4042_s17, 8  ;;  %s356_s22 = scalar_lea.vmem [#allocation2], %s2590_s26 }
 0xd94   : > { %s2479_s11 = sshll.u32 %s356_s22, 4  ;;  %s5442_s21 = scalar_lea.hbm %s5494_s9, %s2928_s27  ;;  %s5444_s11 = int_to_ptr.vmem [resolvable:$true] %s2479_s11 }
 0xd95   : > { %v2374_v41 = vsub.s32 0, %v2373_v40  ;;  %v2378_v28 = vsub.s32 1, %v2373_v40  ;;  %s2460_s15 = scalar_lea.sflag [#allocation3], %s4397_s29  ;;  %s3890_s17 = scalar_lea.vmem %s5444_s11, 256 }
 0xd96   : > { %p3891_p1 = scmp.ne.s32.totalorder %s5444_s11, %s3890_s17  ;;  %s3965_s20 = smov [#allocation2]  }
 0xd97   : > { %v2375_v43 = vrot.slane %v2370_v42, %v2374_v41  ;;  %v2379_v44 = vrot.slane %v2370_v42, %v2378_v28  ;;  %s3894_s18 = sshll.u32 %s3965_s20, 4  ;;  %s3895_s18 = int_to_ptr.vmem [resolvable:$false] %s3894_s18 }
 0xd98   : > { %p3892_p2 = pnand %p3891_p1, %p4059_p5  ;;  %s3896_s12 = scalar_lea.vmem %s3895_s18, 512 }
 0xd99   : > { %p3897_p4 = scmp.lt.s32.totalorder %s5444_s11, %s3895_s18  ;;  %p3898_p7 = scmp.lt.s32.totalorder %s3896_s12, %s3890_s17 }
 0xd9a   : > { %p3893_p3 = pneg %p3892_p2 }
 0xd9b   : > { %p3899_p8 = por %p3898_p7, %p3897_p4 }
 0xd9d   : > { %p3900_p9 = pnand %p3899_p8, %p3893_p3 }
 0xe57   : > { %v2452_v45 = vpop.f32.mrb[20].mxu0 }
 0xe58   : > { %v2453_v46 = vadd.f32 %v2452_v45, %v2375_v43  ;;  %v2454_v47 = vpop.f32.mrb[21].mxu0 }
 0xe59   : > { %v2455_v11 = vadd.f32 %v2454_v47, %v2379_v44 }
 0xe5a   : > { %2457 = vst [vmem:[%s356_s22] sm:$0xff] %v2453_v46 }
 0xe5b   : > { %2458 = vst [vmem:[%s356_s22 + $0x8] sm:$0xff] %v2455_v11 }
 0xe5c   : > { %3903 = shalt.err (!%p3900_p9)
}
 0xe5d   : > { %s3904_s29 = scalar_lea.hbm %s5442_s21, 256  ;;  %s3908_s0 = scalar_lea.hbm %s5494_s9, 512 }
 0xe5e   : > { %p3905_p10 = scmp.ne.s32.totalorder %s5442_s21, %s3904_s29  ;;  %p3909_p13 = scmp.lt.u32.totalorder %s5442_s21, %s5494_s9 }
 0xe5f   : > { %p3910_p0 = scmp.lt.u32.totalorder %s3908_s0, %s3904_s29  ;;  %p3912_p2 = scmp.lt.u32.totalorder %s3904_s29, %s5442_s21 }
 0xe60   : > { %p3906_p11 = pnand %p3905_p10, %p4059_p5 }
 0xe61   : > { %p3911_p1 = por %p3910_p0, %p3909_p13 }
 0xe62   : > { %p3907_p12 = pneg %p3906_p11 }
 0xe63   : > { %p3913_p3 = por %p3912_p2, %p3911_p1 }
 0xe65   : > { %p3914_p4 = pnand %p3913_p3, %p3907_p12 }
 0xe67   : > { %3917 = shalt.err (!%p3914_p4)
}
 0xe68   : > { %3794 = dma.vmem_to_hbm [thread:$0]  (%p4059_p5), %s5444_s11, 256, %s5442_s21, %s2460_s15  }
 0xe69 PF: > { %p3805_p7 = scmp.ge.s32.totalorder %s3956_s16, 2  ;;  %s2507_s28 = sand.u32 1, %s3944_s13  }
 0xe6a   : > { %s2508_s30 = scalar_lea.sflag [#allocation3], %s2507_s28 }
 0xe6b   : > { %p3799_p8 = pnand %p3805_p7, %p4063_p6 }
 0xe6d   : > { %3935 = dma.done.wait (!%p3799_p8), %s2508_s30, 256  }
 0xe6e   : > { %3937 = vsyncadd (!%p3799_p8), %s2508_s30, 4294967040  ;;  %s2517_s17 = scalar_lea.sflag [#allocation5], %s2507_s28 }
 0xe6f   : > { %3939 = dma.done.wait (!%p3799_p8), %s2517_s17, 512  }
 0xe70   : > { %3941 = vsyncadd (!%p3799_p8), %s2517_s17, 4294966784  ;;  %s5503_s23 = sld [smem:[#allocation8_spill]]  ;;  %s5504_s15 = sld [smem:[#allocation9_spill]] }
 0xe71   : > { %p24_p5 = scmp.ge.s32.totalorder %s4046_s19, 4   ;;  %s5505_s13 = smov %s3948_s14 }
 0xe72   : > { %s5507_s16 = smov %s4046_s19 }
 0xe73   :  { %26 = sbr.rel (!%p24_p5) target bundleno = 7 (0x7), region = 129 }
 0xe76   : > { %s5506_s14 = smov %s5503_s23 }
 0xe7a   :  { %2522 = vsyncpa [#allocation3], 1 }
 0xe7b   :  { %2524 = vsyncpa [#allocation3 + $0x1], 1 }
 0xe7c   :  { %2525 = vsyncpa [#allocation5], 1 }
 0xe7d   :  { %2527 = vsyncpa [#allocation5 + $0x1], 1 }

</bundles_post_ra>
